<compile_context>
chip_gen: v7x
topology: tpu7x:2x2x1
jax: 0.10.0
libtpu: 0.0.40
codegen_flags: <defaults>
</compile_context>

<pallas_src>
import functools

import numpy as np
import jax
import jax.numpy as jnp
from jax import lax
from jax.experimental import pallas as pl
from jax.experimental.pallas import tpu as pltpu

_LANE = 128
_SUBLANE = 8


# ----------------------------------------------------------------------------
# Fused Pallas kernel: entire SPARK_Net forward on VMEM-resident data
# ----------------------------------------------------------------------------
def _spark_kernel(x_ref, w1_ref, w2_ref, w3_ref, w4_ref, w5_ref, w6_ref,
                  mask_ref, out_ref, *, wpad, nlane, shift_pad):
    """Layout: activations are (cp, nlane) f32 = channels (sublane-padded) x
    flattened spatially-zero-padded pixels (lane-padded to 128 multiple).
    `mask_ref` is 1.0 on interior pixels, 0.0 on spatial-border / lane-pad
    columns; it re-zeros the border after every 3x3 conv so the next layer's
    shifted taps read correct zero padding."""
    mask = mask_ref[...]                                  # (1, nlane)
    x = x_ref[...]                                        # (cp, nlane)

    def conv3x3(a, wf):
        # a: (cp, nlane) with zero spatial border; wf: (cp, 9*cp) with columns
        # ordered (kh, kw, cin).
        cp = a.shape[0]
        zpad = jnp.zeros((cp, shift_pad), jnp.float32)
        ap = jnp.concatenate([zpad, a, zpad], axis=1)     # zero-extend lanes
        taps = []
        for dh in (-1, 0, 1):                             # kh = dh + 1
            for dw in (-1, 0, 1):                         # kw = dw + 1
                start = shift_pad + dh * wpad + dw        # static lane shift
                taps.append(ap[:, start:start + nlane])
        patches = jnp.concatenate(taps, axis=0)           # (9*cp, nlane)
        return jnp.dot(wf, patches, preferred_element_type=jnp.float32)

    def conv1x1(a, wf):
        return jnp.dot(wf, a, preferred_element_type=jnp.float32)

    y = jnp.maximum(conv3x3(x, w1_ref[...]), 0.0) * mask   # relu(conv1(x))
    y = jnp.maximum(conv1x1(y, w2_ref[...]), 0.0)          # relu(conv2(y))
    y = jnp.maximum(conv3x3(y, w3_ref[...]), 0.0) * mask   # relu(conv3(y))
    z = x + y                                               # skip connection
    z = jnp.maximum(conv3x3(z, w4_ref[...]), 0.0) * mask   # relu(conv4(z))
    z = jnp.maximum(conv1x1(z, w5_ref[...]), 0.0)          # relu(conv5(z))
    out_ref[...] = conv3x3(z, w6_ref[...]) * mask           # conv6(z)


# ----------------------------------------------------------------------------
# Plain-JAX glue: layout prep + pallas_call wrapper
# ----------------------------------------------------------------------------
def _prep_weight(w_oihw, cp):
    """(O, I, kh, kw) conv weight -> (cp, kh*kw*cp), columns ordered (kh,kw,cin)."""
    o, i, kh, kw = w_oihw.shape
    wp = jnp.pad(w_oihw.astype(jnp.float32),
                 ((0, cp - o), (0, cp - i), (0, 0), (0, 0)))
    return jnp.transpose(wp, (0, 2, 3, 1)).reshape(cp, kh * kw * cp)


@jax.jit
def spark_net_forward(x_nchw, w1, w2, w3, w4, w5, w6, acs):
    n, c, h, w = x_nchw.shape
    hpad, wpad = h + 2, w + 2                        # 1-pixel zero border
    npix = n * hpad * wpad
    nlane = ((npix + _LANE - 1) // _LANE) * _LANE    # lane-pad to 128 multiple
    ch_max = max(c, w1.shape[0], w2.shape[0], w3.shape[0],
                 w4.shape[0], w5.shape[0], w6.shape[0])
    cp = ((ch_max + _SUBLANE - 1) // _SUBLANE) * _SUBLANE

    # Input: pad channels to cp, pad spatially, flatten to (cp, nlane).
    xpad = jnp.pad(x_nchw.astype(jnp.float32),
                   ((0, 0), (0, cp - c), (1, 1), (1, 1)))
    xf = jnp.transpose(xpad, (1, 0, 2, 3)).reshape(cp, npix)
    xf = jnp.pad(xf, ((0, 0), (0, nlane - npix)))

    # Interior-pixel mask — trace-time numpy constant (no runtime cost).
    q = np.arange(npix)
    hq = (q // wpad) % hpad
    wq = q % wpad
    interior = (hq >= 1) & (hq <= h) & (wq >= 1) & (wq <= w)
    mask_np = np.zeros((1, nlane), np.float32)
    mask_np[0, :npix] = interior.astype(np.float32)
    mask = jnp.asarray(mask_np)

    wf = [_prep_weight(wi, cp) for wi in (w1, w2, w3, w4, w5, w6)]

    kernel = functools.partial(_spark_kernel, wpad=wpad, nlane=nlane,
                               shift_pad=wpad + 1)
    vmem = pl.BlockSpec(memory_space=pltpu.MemorySpace.VMEM)
    out_flat = pl.pallas_call(
        kernel,
        out_shape=jax.ShapeDtypeStruct((cp, nlane), jnp.float32),
        in_specs=[vmem] * 8,
        out_specs=vmem,
    )(xf, *wf, mask)

    # Row 0 is the single real output channel; drop spatial border, repack NCHW.
    out = out_flat[0, :npix].reshape(n, hpad, wpad)[:, 1:1 + h, 1:1 + w]
    out_nchw = out[:, None, :, :]                    # (N, 1, H, W)
    loss_out = out_nchw[:, :, :, acs]                # ACS column slice
    return out_nchw, loss_out


# ----------------------------------------------------------------------------
# Pure-JAX reference (sanity check)
# ----------------------------------------------------------------------------
def _ref_conv(x, w, pad):
    return lax.conv_general_dilated(
        x, w, window_strides=(1, 1), padding=[(pad, pad), (pad, pad)],
        dimension_numbers=("NCHW", "OIHW", "NCHW"))


def spark_net_reference(x, w1, w2, w3, w4, w5, w6, acs):
    y = jax.nn.relu(_ref_conv(x, w1, 1))
    y = jax.nn.relu(_ref_conv(y, w2, 0))
    y = jax.nn.relu(_ref_conv(y, w3, 1))
    z = x + y
    z = jax.nn.relu(_ref_conv(z, w4, 1))
    z = jax.nn.relu(_ref_conv(z, w5, 0))
    out = _ref_conv(z, w6, 1)
    return out, out[:, :, :, acs]


# ----------------------------------------------------------------------------
if __name__ == "__main__":
    coils = 4
    kernelsize = 3
    N, H, W = 2, 16, 16
    acs = jnp.arange(4, 12)               # ACS columns (8 central columns)

    key = jax.random.PRNGKey(0)
    kx, k1, k2, k3, k4, k5, k6 = jax.random.split(key, 7)

    def init_w(k, cout, cin, ksz):
        fan_in = cin * ksz * ksz
        return (jax.random.normal(k, (cout, cin, ksz, ksz), jnp.float32)
                / jnp.sqrt(jnp.float32(fan_in)))

    # Conv2d weight shapes: (out_ch, in_ch, kh, kw), bias=False everywhere.
    w1 = init_w(k1, coils * 2, coils * 2, kernelsize)
    w2 = init_w(k2, coils, coils * 2, 1)
    w3 = init_w(k3, coils * 2, coils, kernelsize)
    w4 = init_w(k4, coils, coils * 2, kernelsize)
    w5 = init_w(k5, coils // 4, coils, 1)
    w6 = init_w(k6, 1, coils // 4, kernelsize)

    x = jax.random.normal(kx, (N, coils * 2, H, W), jnp.float32)

    out, loss_out = spark_net_forward(x, w1, w2, w3, w4, w5, w6, acs)
    out = jax.block_until_ready(out)
    loss_out = jax.block_until_ready(loss_out)

    # Shape / numerics sanity check vs a pure-JAX reference.
    ref_out, ref_loss = spark_net_reference(x, w1, w2, w3, w4, w5, w6, acs)
    assert out.shape == (N, 1, H, W)
    assert loss_out.shape == (N, 1, H, int(acs.shape[0]))
    assert jnp.allclose(out, ref_out, atol=1e-3, rtol=1e-3)
    assert jnp.allclose(loss_out, ref_loss, atol=1e-3, rtol=1e-3)

    print("KERNEL_OK")
</pallas_src>

<mosaic_0001>
module attributes {stable_mosaic.version = 11 : i64} {
  func.func @_spark_kernel(%arg0: memref<8x768xf32, #tpu.memory_space<vmem>>, %arg1: memref<8x72xf32, #tpu.memory_space<vmem>>, %arg2: memref<8x8xf32, #tpu.memory_space<vmem>>, %arg3: memref<8x72xf32, #tpu.memory_space<vmem>>, %arg4: memref<8x72xf32, #tpu.memory_space<vmem>>, %arg5: memref<8x8xf32, #tpu.memory_space<vmem>>, %arg6: memref<8x72xf32, #tpu.memory_space<vmem>>, %arg7: memref<1x768xf32, #tpu.memory_space<vmem>>, %arg8: memref<8x768xf32, #tpu.memory_space<vmem>>) attributes {dimension_semantics = [], scalar_prefetch = 0 : i64, scratch_operands = 0 : i64, tpu.core_type = #tpu.core_type<tc>} {
    %c0 = arith.constant 0 : index
    %c0_0 = arith.constant 0 : index
    %0 = vector.load %arg7[%c0, %c0_0] : memref<1x768xf32, #tpu.memory_space<vmem>>, vector<1x768xf32>
    %c0_1 = arith.constant 0 : index
    %c0_2 = arith.constant 0 : index
    %1 = vector.load %arg0[%c0_1, %c0_2] : memref<8x768xf32, #tpu.memory_space<vmem>>, vector<8x768xf32>
    %c0_3 = arith.constant 0 : index
    %c0_4 = arith.constant 0 : index
    %2 = vector.load %arg1[%c0_3, %c0_4] : memref<8x72xf32, #tpu.memory_space<vmem>>, vector<8x72xf32>
    %cst = arith.constant 0.000000e+00 : f32
    %3 = vector.broadcast %cst : f32 to vector<8x19xf32>
    %4 = tpu.concatenate %3, %1, %3 in 1 : vector<8x19xf32>, vector<8x768xf32>, vector<8x19xf32> -> vector<8x806xf32>
    %5 = vector.extract_strided_slice %4 {offsets = [0, 0], sizes = [8, 768], strides = [1, 1]} : vector<8x806xf32> to vector<8x768xf32>
    %6 = vector.extract_strided_slice %4 {offsets = [0, 1], sizes = [8, 768], strides = [1, 1]} : vector<8x806xf32> to vector<8x768xf32>
    %7 = vector.extract_strided_slice %4 {offsets = [0, 2], sizes = [8, 768], strides = [1, 1]} : vector<8x806xf32> to vector<8x768xf32>
    %8 = vector.extract_strided_slice %4 {offsets = [0, 18], sizes = [8, 768], strides = [1, 1]} : vector<8x806xf32> to vector<8x768xf32>
    %9 = vector.extract_strided_slice %4 {offsets = [0, 19], sizes = [8, 768], strides = [1, 1]} : vector<8x806xf32> to vector<8x768xf32>
    %10 = vector.extract_strided_slice %4 {offsets = [0, 20], sizes = [8, 768], strides = [1, 1]} : vector<8x806xf32> to vector<8x768xf32>
    %11 = vector.extract_strided_slice %4 {offsets = [0, 36], sizes = [8, 768], strides = [1, 1]} : vector<8x806xf32> to vector<8x768xf32>
    %12 = vector.extract_strided_slice %4 {offsets = [0, 37], sizes = [8, 768], strides = [1, 1]} : vector<8x806xf32> to vector<8x768xf32>
    %13 = vector.extract_strided_slice %4 {offsets = [0, 38], sizes = [8, 768], strides = [1, 1]} : vector<8x806xf32> to vector<8x768xf32>
    %14 = tpu.concatenate %5, %6, %7, %8, %9, %10, %11, %12, %13 in 0 : vector<8x768xf32>, vector<8x768xf32>, vector<8x768xf32>, vector<8x768xf32>, vector<8x768xf32>, vector<8x768xf32>, vector<8x768xf32>, vector<8x768xf32>, vector<8x768xf32> -> vector<72x768xf32>
    %cst_5 = arith.constant dense<0.000000e+00> : vector<8x768xf32>
    %15 = tpu.matmul %2, %14, %cst_5 {dimension_numbers = #tpu.dot_dimension_numbers<[1], [0], [0], [1], [0, 0, 1, 1], [], []>} : vector<8x72xf32>, vector<72x768xf32>, vector<8x768xf32> -> vector<8x768xf32>
    %cst_6 = arith.constant 0.000000e+00 : f32
    %16 = vector.broadcast %cst_6 : f32 to vector<8x768xf32>
    %17 = arith.maximumf %15, %16 : vector<8x768xf32>
    %18 = vector.broadcast %0 : vector<1x768xf32> to vector<8x768xf32>
    %19 = arith.mulf %17, %18 : vector<8x768xf32>
    %c0_7 = arith.constant 0 : index
    %c0_8 = arith.constant 0 : index
    %20 = vector.load %arg2[%c0_7, %c0_8] : memref<8x8xf32, #tpu.memory_space<vmem>>, vector<8x8xf32>
    %cst_9 = arith.constant dense<0.000000e+00> : vector<8x768xf32>
    %21 = tpu.matmul %20, %19, %cst_9 {dimension_numbers = #tpu.dot_dimension_numbers<[1], [0], [0], [1], [0, 0, 1, 1], [], []>} : vector<8x8xf32>, vector<8x768xf32>, vector<8x768xf32> -> vector<8x768xf32>
    %cst_10 = arith.constant 0.000000e+00 : f32
    %22 = vector.broadcast %cst_10 : f32 to vector<8x768xf32>
    %23 = arith.maximumf %21, %22 : vector<8x768xf32>
    %c0_11 = arith.constant 0 : index
    %c0_12 = arith.constant 0 : index
    %24 = vector.load %arg3[%c0_11, %c0_12] : memref<8x72xf32, #tpu.memory_space<vmem>>, vector<8x72xf32>
    %cst_13 = arith.constant 0.000000e+00 : f32
    %25 = vector.broadcast %cst_13 : f32 to vector<8x19xf32>
    %26 = tpu.concatenate %25, %23, %25 in 1 : vector<8x19xf32>, vector<8x768xf32>, vector<8x19xf32> -> vector<8x806xf32>
    %27 = vector.extract_strided_slice %26 {offsets = [0, 0], sizes = [8, 768], strides = [1, 1]} : vector<8x806xf32> to vector<8x768xf32>
    %28 = vector.extract_strided_slice %26 {offsets = [0, 1], sizes = [8, 768], strides = [1, 1]} : vector<8x806xf32> to vector<8x768xf32>
    %29 = vector.extract_strided_slice %26 {offsets = [0, 2], sizes = [8, 768], strides = [1, 1]} : vector<8x806xf32> to vector<8x768xf32>
    %30 = vector.extract_strided_slice %26 {offsets = [0, 18], sizes = [8, 768], strides = [1, 1]} : vector<8x806xf32> to vector<8x768xf32>
    %31 = vector.extract_strided_slice %26 {offsets = [0, 19], sizes = [8, 768], strides = [1, 1]} : vector<8x806xf32> to vector<8x768xf32>
    %32 = vector.extract_strided_slice %26 {offsets = [0, 20], sizes = [8, 768], strides = [1, 1]} : vector<8x806xf32> to vector<8x768xf32>
    %33 = vector.extract_strided_slice %26 {offsets = [0, 36], sizes = [8, 768], strides = [1, 1]} : vector<8x806xf32> to vector<8x768xf32>
    %34 = vector.extract_strided_slice %26 {offsets = [0, 37], sizes = [8, 768], strides = [1, 1]} : vector<8x806xf32> to vector<8x768xf32>
    %35 = vector.extract_strided_slice %26 {offsets = [0, 38], sizes = [8, 768], strides = [1, 1]} : vector<8x806xf32> to vector<8x768xf32>
    %36 = tpu.concatenate %27, %28, %29, %30, %31, %32, %33, %34, %35 in 0 : vector<8x768xf32>, vector<8x768xf32>, vector<8x768xf32>, vector<8x768xf32>, vector<8x768xf32>, vector<8x768xf32>, vector<8x768xf32>, vector<8x768xf32>, vector<8x768xf32> -> vector<72x768xf32>
    %cst_14 = arith.constant dense<0.000000e+00> : vector<8x768xf32>
    %37 = tpu.matmul %24, %36, %cst_14 {dimension_numbers = #tpu.dot_dimension_numbers<[1], [0], [0], [1], [0, 0, 1, 1], [], []>} : vector<8x72xf32>, vector<72x768xf32>, vector<8x768xf32> -> vector<8x768xf32>
    %cst_15 = arith.constant 0.000000e+00 : f32
    %38 = vector.broadcast %cst_15 : f32 to vector<8x768xf32>
    %39 = arith.maximumf %37, %38 : vector<8x768xf32>
    %40 = vector.broadcast %0 : vector<1x768xf32> to vector<8x768xf32>
    %41 = arith.mulf %39, %40 : vector<8x768xf32>
    %42 = arith.addf %1, %41 : vector<8x768xf32>
    %c0_16 = arith.constant 0 : index
    %c0_17 = arith.constant 0 : index
    %43 = vector.load %arg4[%c0_16, %c0_17] : memref<8x72xf32, #tpu.memory_space<vmem>>, vector<8x72xf32>
    %cst_18 = arith.constant 0.000000e+00 : f32
    %44 = vector.broadcast %cst_18 : f32 to vector<8x19xf32>
    %45 = tpu.concatenate %44, %42, %44 in 1 : vector<8x19xf32>, vector<8x768xf32>, vector<8x19xf32> -> vector<8x806xf32>
    %46 = vector.extract_strided_slice %45 {offsets = [0, 0], sizes = [8, 768], strides = [1, 1]} : vector<8x806xf32> to vector<8x768xf32>
    %47 = vector.extract_strided_slice %45 {offsets = [0, 1], sizes = [8, 768], strides = [1, 1]} : vector<8x806xf32> to vector<8x768xf32>
    %48 = vector.extract_strided_slice %45 {offsets = [0, 2], sizes = [8, 768], strides = [1, 1]} : vector<8x806xf32> to vector<8x768xf32>
    %49 = vector.extract_strided_slice %45 {offsets = [0, 18], sizes = [8, 768], strides = [1, 1]} : vector<8x806xf32> to vector<8x768xf32>
    %50 = vector.extract_strided_slice %45 {offsets = [0, 19], sizes = [8, 768], strides = [1, 1]} : vector<8x806xf32> to vector<8x768xf32>
    %51 = vector.extract_strided_slice %45 {offsets = [0, 20], sizes = [8, 768], strides = [1, 1]} : vector<8x806xf32> to vector<8x768xf32>
    %52 = vector.extract_strided_slice %45 {offsets = [0, 36], sizes = [8, 768], strides = [1, 1]} : vector<8x806xf32> to vector<8x768xf32>
    %53 = vector.extract_strided_slice %45 {offsets = [0, 37], sizes = [8, 768], strides = [1, 1]} : vector<8x806xf32> to vector<8x768xf32>
    %54 = vector.extract_strided_slice %45 {offsets = [0, 38], sizes = [8, 768], strides = [1, 1]} : vector<8x806xf32> to vector<8x768xf32>
    %55 = tpu.concatenate %46, %47, %48, %49, %50, %51, %52, %53, %54 in 0 : vector<8x768xf32>, vector<8x768xf32>, vector<8x768xf32>, vector<8x768xf32>, vector<8x768xf32>, vector<8x768xf32>, vector<8x768xf32>, vector<8x768xf32>, vector<8x768xf32> -> vector<72x768xf32>
    %cst_19 = arith.constant dense<0.000000e+00> : vector<8x768xf32>
    %56 = tpu.matmul %43, %55, %cst_19 {dimension_numbers = #tpu.dot_dimension_numbers<[1], [0], [0], [1], [0, 0, 1, 1], [], []>} : vector<8x72xf32>, vector<72x768xf32>, vector<8x768xf32> -> vector<8x768xf32>
    %cst_20 = arith.constant 0.000000e+00 : f32
    %57 = vector.broadcast %cst_20 : f32 to vector<8x768xf32>
    %58 = arith.maximumf %56, %57 : vector<8x768xf32>
    %59 = vector.broadcast %0 : vector<1x768xf32> to vector<8x768xf32>
    %60 = arith.mulf %58, %59 : vector<8x768xf32>
    %c0_21 = arith.constant 0 : index
    %c0_22 = arith.constant 0 : index
    %61 = vector.load %arg5[%c0_21, %c0_22] : memref<8x8xf32, #tpu.memory_space<vmem>>, vector<8x8xf32>
    %cst_23 = arith.constant dense<0.000000e+00> : vector<8x768xf32>
    %62 = tpu.matmul %61, %60, %cst_23 {dimension_numbers = #tpu.dot_dimension_numbers<[1], [0], [0], [1], [0, 0, 1, 1], [], []>} : vector<8x8xf32>, vector<8x768xf32>, vector<8x768xf32> -> vector<8x768xf32>
    %cst_24 = arith.constant 0.000000e+00 : f32
    %63 = vector.broadcast %cst_24 : f32 to vector<8x768xf32>
    %64 = arith.maximumf %62, %63 : vector<8x768xf32>
    %c0_25 = arith.constant 0 : index
    %c0_26 = arith.constant 0 : index
    %65 = vector.load %arg6[%c0_25, %c0_26] : memref<8x72xf32, #tpu.memory_space<vmem>>, vector<8x72xf32>
    %cst_27 = arith.constant 0.000000e+00 : f32
    %66 = vector.broadcast %cst_27 : f32 to vector<8x19xf32>
    %67 = tpu.concatenate %66, %64, %66 in 1 : vector<8x19xf32>, vector<8x768xf32>, vector<8x19xf32> -> vector<8x806xf32>
    %68 = vector.extract_strided_slice %67 {offsets = [0, 0], sizes = [8, 768], strides = [1, 1]} : vector<8x806xf32> to vector<8x768xf32>
    %69 = vector.extract_strided_slice %67 {offsets = [0, 1], sizes = [8, 768], strides = [1, 1]} : vector<8x806xf32> to vector<8x768xf32>
    %70 = vector.extract_strided_slice %67 {offsets = [0, 2], sizes = [8, 768], strides = [1, 1]} : vector<8x806xf32> to vector<8x768xf32>
    %71 = vector.extract_strided_slice %67 {offsets = [0, 18], sizes = [8, 768], strides = [1, 1]} : vector<8x806xf32> to vector<8x768xf32>
    %72 = vector.extract_strided_slice %67 {offsets = [0, 19], sizes = [8, 768], strides = [1, 1]} : vector<8x806xf32> to vector<8x768xf32>
    %73 = vector.extract_strided_slice %67 {offsets = [0, 20], sizes = [8, 768], strides = [1, 1]} : vector<8x806xf32> to vector<8x768xf32>
    %74 = vector.extract_strided_slice %67 {offsets = [0, 36], sizes = [8, 768], strides = [1, 1]} : vector<8x806xf32> to vector<8x768xf32>
    %75 = vector.extract_strided_slice %67 {offsets = [0, 37], sizes = [8, 768], strides = [1, 1]} : vector<8x806xf32> to vector<8x768xf32>
    %76 = vector.extract_strided_slice %67 {offsets = [0, 38], sizes = [8, 768], strides = [1, 1]} : vector<8x806xf32> to vector<8x768xf32>
    %77 = tpu.concatenate %68, %69, %70, %71, %72, %73, %74, %75, %76 in 0 : vector<8x768xf32>, vector<8x768xf32>, vector<8x768xf32>, vector<8x768xf32>, vector<8x768xf32>, vector<8x768xf32>, vector<8x768xf32>, vector<8x768xf32>, vector<8x768xf32> -> vector<72x768xf32>
    %cst_28 = arith.constant dense<0.000000e+00> : vector<8x768xf32>
    %78 = tpu.matmul %65, %77, %cst_28 {dimension_numbers = #tpu.dot_dimension_numbers<[1], [0], [0], [1], [0, 0, 1, 1], [], []>} : vector<8x72xf32>, vector<72x768xf32>, vector<8x768xf32> -> vector<8x768xf32>
    %79 = vector.broadcast %0 : vector<1x768xf32> to vector<8x768xf32>
    %80 = arith.mulf %78, %79 : vector<8x768xf32>
    %c0_29 = arith.constant 0 : index
    %c0_30 = arith.constant 0 : index
    %81 = vector.load %arg8[%c0_29, %c0_30] : memref<8x768xf32, #tpu.memory_space<vmem>>, vector<8x768xf32>
    tpu.vector_store %arg8[%c0_29, %c0_30], %80 {strides = array<i32>} : memref<8x768xf32, #tpu.memory_space<vmem>>, vector<8x768xf32>,
    return
  }
}

</mosaic_0001>

<bundles_post_ra>
// kernel: squeeze.1
= control target key start
LH: loop header
LB: loop body
LE: loop exit
PB: predicated region body
PF: predicated region fallthrough
CT: control target
= control target key end

     0   :  { %s386_s10 = smov 118   ;;  %s387_s11 = smov 114   ;;  %vm213_vm0 = vcmask 965632   ;;  %vm227_vm1 = vcmask 982016   ;;  %vm241_vm2 = vcmask 998400   ;;  %vm255_vm3 = vcmask 1014784   ;;  %s708_s0 = inlined_call_operand.vmem [shape: f32[648], index: 0, kind: input, shape index: {}]   ;;  %s709_s1 = inlined_call_operand.vmem [shape: f32[2,18,18], index: 1, kind: output, shape index: {}]  }
   0x1   :  { %v278_v0 = vld [vmem:[%s708_s0 + $0x4] sm:$0x1]   ;;  %v282_v1 = vld [vmem:[%s708_s0 + $0x2] sm:$0x1]   ;;  %v280_v2 = vld [vmem:[%s708_s0 + $0x3] sm:$0x1]  }
   0x2   :  { %7 = vrot.lane.b32.xlu0 %v278_v0, %s386_s10  ;;  %21 = vrot.lane.b32.xlu1 %v282_v1, %s387_s11  ;;  %v284_v3 = vld [vmem:[%s708_s0 + $0x1] sm:$0x1]   ;;  %s388_s16 = smov 116   ;;  %s389_s17 = smov 112   ;;  %v33_v4 = vld [vmem:[%s708_s0] sm:$0x1]  }
   0x3   :  { %v287_v5 = vld [vmem:[%s708_s0 + $0x4] sm:$0x1]   ;;  %v333_v7 = vld [vmem:[%s708_s0 + $0x5] sm:$0x1]   ;;  %v336_v8 = vld [vmem:[%s708_s0 + $0x3] sm:$0x1]  }
   0x4   :  { %v332_v6 = vld [vmem:[%s708_s0 + $0x4] sm:$0x1]   ;;  %s390_s30 = smov 110   ;;  %s391_s2 = smov 100   ;;  %v340_v12 = vld [vmem:[%s708_s0 + $0x2] sm:$0x1]  }
   0x5   :  { %v337_v9 = vld [vmem:[%s708_s0 + $0x4] sm:$0x1]   ;;  %v214_v10 = vsel %vm213_vm0, %v333_v7, %v332_v6  ;;  %v341_v13 = vld [vmem:[%s708_s0 + $0x3] sm:$0x1]   ;;  %v344_v14 = vld [vmem:[%s708_s0 + $0x1] sm:$0x1]  }
   0x6   :  { %14 = vrot.lane.b32.xlu0 %v280_v2, %s388_s16  ;;  %28 = vrot.lane.b32.xlu1 %v284_v3, %s389_s17  ;;  %v228_v11 = vsel %vm227_vm1, %v337_v9, %v336_v8  ;;  %v345_v15 = vld [vmem:[%s708_s0 + $0x2] sm:$0x1]   ;;  %s392_s11 = smov 10   ;;  %s393_s12 = smov 8   ;;  %v242_v16 = vsel %vm241_vm2, %v341_v13, %v340_v12  ;;  %v265_v18 = vld [vmem:[%s708_s0] sm:$0x1]  }
   0x7   :  { %v256_v17 = vsel %vm255_vm3, %v345_v15, %v344_v14  ;;  %v348_v19 = vld [vmem:[%s708_s0 + $0x1] sm:$0x1]   ;;  %vm268_vm4 = vcmask 1031168   ;;  %s394_s17 = smov 6   ;;  %s395_s18 = smov 4   ;;  %vm3_vm5 = vcmask 146432  }
   0x8   :  { %v269_v20 = vsel %vm268_vm4, %v348_v19, %v265_v18  ;;  %v289_v21 = vld [vmem:[%s708_s0 + $0x3] sm:$0x1]   ;;  %s396_s21 = smov 2   ;;  %s397_s22 = smov 98   ;;  %v291_v22 = vld [vmem:[%s708_s0 + $0x2] sm:$0x1]  }
   0x9   :  { %v293_v23 = vld [vmem:[%s708_s0 + $0x1] sm:$0x1]   ;;  %s398_s27 = smov 96   ;;  %s399_s28 = smov 94   ;;  %v67_v24 = vld [vmem:[%s708_s0] sm:$0x1]  }
   0xa   :  { %34 = vrot.lane.b32.xlu0 %v33_v4, %s390_s30  ;;  %41 = vrot.lane.b32.xlu1 %v287_v5, %s391_s2  ;;  %v296_v25 = vld [vmem:[%s708_s0 + $0x4] sm:$0x1]   ;;  %s400_s4 = smov 92   ;;  %s401_s5 = smov 82   ;;  %v298_v26 = vld [vmem:[%s708_s0 + $0x3] sm:$0x1]  }
   0xb   :  { %v300_v27 = vld [vmem:[%s708_s0 + $0x2] sm:$0x1]   ;;  %s402_s10 = smov 80   ;;  %v302_v28 = vld [vmem:[%s708_s0 + $0x1] sm:$0x1]   ;;  %s404_s16 = smov 76  }
   0xc   :  { %v101_v29 = vld [vmem:[%s708_s0] sm:$0x1]   ;;  %v305_v30 = vld [vmem:[%s708_s0 + $0x4] sm:$0x1]   ;;  %v307_v31 = vld [vmem:[%s708_s0 + $0x3] sm:$0x1]  }
   0xd   :  { %s407_s23 = smov 62   ;;  %v309_v32 = vld [vmem:[%s708_s0 + $0x2] sm:$0x1]   ;;  %v311_v33 = vld [vmem:[%s708_s0 + $0x1] sm:$0x1]   ;;  %s409_s29 = smov 58  }
   0xe   :  { %215 = vrot.lane.b32.xlu0 %v214_v10, %s392_s11  ;;  %229 = vrot.lane.b32.xlu1 %v228_v11, %s393_s12  ;;  %s403_s11 = smov 78   ;;  %v135_v34 = vld [vmem:[%s708_s0] sm:$0x1]   ;;  %v314_v35 = vld [vmem:[%s708_s0 + $0x4] sm:$0x1]   ;;  %s411_s6 = smov 46  }
   0xf   :  { %v316_v36 = vld [vmem:[%s708_s0 + $0x3] sm:$0x1]   ;;  %v318_v37 = vld [vmem:[%s708_s0 + $0x2] sm:$0x1]   ;;  %s413_s12 = smov 42   ;;  %vm217_vm6 = vcmask 80896  }
  0x10   :  { %v320_v38 = vld [vmem:[%s708_s0 + $0x1] sm:$0x1]   ;;  %v169_v39 = vld [vmem:[%s708_s0] sm:$0x1]   ;;  %v323_v41 = vld [vmem:[%s708_s0 + $0x4] sm:$0x1]  }
  0x11   :  { %v2_v40 = vld [vmem:[%s708_s0] sm:$0x1]   ;;  %v325_v42 = vld [vmem:[%s708_s0 + $0x3] sm:$0x1]   ;;  %v327_v43 = vld [vmem:[%s708_s0 + $0x2] sm:$0x1]  }
  0x12   :  { %243 = vrot.lane.b32.xlu0 %v242_v16, %s394_s17  ;;  %257 = vrot.lane.b32.xlu1 %v256_v17, %s395_s18  ;;  %s405_s17 = smov 74   ;;  %4 = vst.msk [vmem:[%s709_s1] sm:$0x1] %vm3_vm5, %v2_v40   ;;  %v329_v44 = vld [vmem:[%s708_s0 + $0x1] sm:$0x1]   ;;  %vm231_vm7 = vcmask 64512  }
  0x13   :  { %v203_v45 = vld [vmem:[%s708_s0] sm:$0x1]   ;;  %s420_s0 = smov 20   ;;  %vm220_vm8 = vcmask 146512   ;;  %vm234_vm9 = vcmask 146496   ;;  %vm245_vm10 = vcmask 48128  }
  0x14   :  { %vm259_vm11 = vcmask 31744   ;;  %vm248_vm12 = vcmask 146480   ;;  %vm262_vm13 = vcmask 146464   ;;  %vm272_vm14 = vcmask 15360  }
  0x15   :  { %vm275_vm15 = vcmask 146448  }
  0x16   :  { %270 = vrot.lane.b32.xlu0 %v269_v20, %s396_s21  ;;  %48 = vrot.lane.b32.xlu1 %v289_v21, %s397_s22  ;;  %s406_s22 = smov 64   ;;  %s414_s21 = smov 40  }
  0x1a   :  { %55 = vrot.lane.b32.xlu0 %v291_v22, %s398_s27  ;;  %62 = vrot.lane.b32.xlu1 %v293_v23, %s399_s28  ;;  %s408_s28 = smov 60   ;;  %s416_s27 = smov 28  }
  0x1e   :  { %68 = vrot.lane.b32.xlu0 %v67_v24, %s400_s4  ;;  %75 = vrot.lane.b32.xlu1 %v296_v25, %s401_s5  ;;  %s410_s5 = smov 56   ;;  %s418_s4 = smov 24  }
  0x22   :  { %82 = vrot.lane.b32.xlu0 %v298_v26, %s402_s10  ;;  %89 = vrot.lane.b32.xlu1 %v300_v27, %s403_s11  ;;  %s412_s11 = smov 44  }
  0x26   :  { %96 = vrot.lane.b32.xlu0 %v302_v28, %s404_s16  ;;  %102 = vrot.lane.b32.xlu1 %v101_v29, %s405_s17 }
  0x2a   :  { %109 = vrot.lane.b32.xlu0 %v305_v30, %s406_s22  ;;  %116 = vrot.lane.b32.xlu1 %v307_v31, %s407_s23  ;;  %s415_s22 = smov 38  }
  0x2e   :  { %123 = vrot.lane.b32.xlu0 %v309_v32, %s408_s28  ;;  %130 = vrot.lane.b32.xlu1 %v311_v33, %s409_s29  ;;  %s417_s28 = smov 26  }
  0x32   :  { %136 = vrot.lane.b32.xlu0 %v135_v34, %s410_s5  ;;  %143 = vrot.lane.b32.xlu1 %v314_v35, %s411_s6  ;;  %s419_s5 = smov 22  }
  0x36   :  { %150 = vrot.lane.b32.xlu0 %v316_v36, %s412_s11  ;;  %157 = vrot.lane.b32.xlu1 %v318_v37, %s413_s12 }
  0x3a   :  { %164 = vrot.lane.b32.xlu0 %v320_v38, %s414_s21  ;;  %170 = vrot.lane.b32.xlu1 %v169_v39, %s415_s22 }
  0x3e   :  { %177 = vrot.lane.b32.xlu0 %v323_v41, %s416_s27  ;;  %184 = vrot.lane.b32.xlu1 %v325_v42, %s417_s28 }
  0x42   :  { %191 = vrot.lane.b32.xlu0 %v327_v43, %s418_s4  ;;  %198 = vrot.lane.b32.xlu1 %v329_v44, %s419_s5 }
  0x46   :  { %204 = vrot.lane.b32.xlu0 %v203_v45, %s420_s0 }
  0x74   :  { %v8_v46 = vpop.permute.xlu0 %7   ;;  %v22_v47 = vpop.permute.xlu1 %21  }
  0x75   :  { %279 = vst.msk [vmem:[%s709_s1 + $0x23] sm:$0x1] %vm3_vm5, %v8_v46   ;;  %283 = vst.msk [vmem:[%s709_s1 + $0xf] sm:$0x1] %vm3_vm5, %v22_v47  }
  0x78   :  { %v15_v48 = vpop.permute.xlu0 %14   ;;  %v29_v49 = vpop.permute.xlu1 %28  }
  0x79   :  { %281 = vst.msk [vmem:[%s709_s1 + $0x1c] sm:$0x1] %vm3_vm5, %v15_v48   ;;  %285 = vst.msk [vmem:[%s709_s1 + $0x8] sm:$0x1] %vm3_vm5, %v29_v49  }
  0x7c   :  { %v35_v50 = vpop.permute.xlu0 %34   ;;  %v42_v51 = vpop.permute.xlu1 %41  }
  0x7d   :  { %286 = vst.msk [vmem:[%s709_s1 + $0x1] sm:$0x1] %vm3_vm5, %v35_v50   ;;  %288 = vst.msk [vmem:[%s709_s1 + $0x24] sm:$0x1] %vm3_vm5, %v42_v51  }
  0x80   :  { %v216_v52 = vpop.permute.xlu0 %215   ;;  %v230_v53 = vpop.permute.xlu1 %229  }
  0x81   :  { %334 = vst.msk [vmem:[%s709_s1 + $0x29] sm:$0x1] %vm217_vm6, %v216_v52  }
  0x82   :  { %338 = vst.msk [vmem:[%s709_s1 + $0x22] sm:$0x1] %vm231_vm7, %v230_v53  }
  0x83   :  { %335 = vst.msk [vmem:[%s709_s1 + $0x29] sm:$0x1] %vm220_vm8, %v216_v52  }
  0x84   :  { %339 = vst.msk [vmem:[%s709_s1 + $0x22] sm:$0x1] %vm234_vm9, %v230_v53   ;;  %v244_v54 = vpop.permute.xlu0 %243   ;;  %v258_v55 = vpop.permute.xlu1 %257  }
  0x85   :  { %342 = vst.msk [vmem:[%s709_s1 + $0x1b] sm:$0x1] %vm245_vm10, %v244_v54  }
  0x86   :  { %346 = vst.msk [vmem:[%s709_s1 + $0xe] sm:$0x1] %vm259_vm11, %v258_v55  }
  0x87   :  { %343 = vst.msk [vmem:[%s709_s1 + $0x1b] sm:$0x1] %vm248_vm12, %v244_v54  }
  0x88   :  { %347 = vst.msk [vmem:[%s709_s1 + $0xe] sm:$0x1] %vm262_vm13, %v258_v55   ;;  %v271_v56 = vpop.permute.xlu0 %270   ;;  %v49_v57 = vpop.permute.xlu1 %48  }
  0x89   :  { %349 = vst.msk [vmem:[%s709_s1 + $0x7] sm:$0x1] %vm272_vm14, %v271_v56  }
  0x8a   :  { %290 = vst.msk [vmem:[%s709_s1 + $0x1d] sm:$0x1] %vm3_vm5, %v49_v57  }
  0x8b   :  { %350 = vst.msk [vmem:[%s709_s1 + $0x7] sm:$0x1] %vm275_vm15, %v271_v56  }
  0x8c   :  { %v56_v58 = vpop.permute.xlu0 %55   ;;  %v63_v59 = vpop.permute.xlu1 %62  }
  0x8d   :  { %292 = vst.msk [vmem:[%s709_s1 + $0x10] sm:$0x1] %vm3_vm5, %v56_v58   ;;  %294 = vst.msk [vmem:[%s709_s1 + $0x9] sm:$0x1] %vm3_vm5, %v63_v59  }
  0x90   :  { %v69_v60 = vpop.permute.xlu0 %68   ;;  %v76_v61 = vpop.permute.xlu1 %75  }
  0x91   :  { %295 = vst.msk [vmem:[%s709_s1 + $0x2] sm:$0x1] %vm3_vm5, %v69_v60   ;;  %297 = vst.msk [vmem:[%s709_s1 + $0x25] sm:$0x1] %vm3_vm5, %v76_v61  }
  0x94   :  { %v83_v62 = vpop.permute.xlu0 %82   ;;  %v90_v63 = vpop.permute.xlu1 %89  }
  0x95   :  { %299 = vst.msk [vmem:[%s709_s1 + $0x1e] sm:$0x1] %vm3_vm5, %v83_v62   ;;  %301 = vst.msk [vmem:[%s709_s1 + $0x11] sm:$0x1] %vm3_vm5, %v90_v63  }
  0x98   :  { %v97_v0 = vpop.permute.xlu0 %96   ;;  %v103_v1 = vpop.permute.xlu1 %102  }
  0x99   :  { %303 = vst.msk [vmem:[%s709_s1 + $0xa] sm:$0x1] %vm3_vm5, %v97_v0   ;;  %304 = vst.msk [vmem:[%s709_s1 + $0x3] sm:$0x1] %vm3_vm5, %v103_v1  }
  0x9c   :  { %v110_v2 = vpop.permute.xlu0 %109   ;;  %v117_v3 = vpop.permute.xlu1 %116  }
  0x9d   :  { %306 = vst.msk [vmem:[%s709_s1 + $0x26] sm:$0x1] %vm3_vm5, %v110_v2   ;;  %308 = vst.msk [vmem:[%s709_s1 + $0x1f] sm:$0x1] %vm3_vm5, %v117_v3  }
  0xa0   :  { %v124_v4 = vpop.permute.xlu0 %123   ;;  %v131_v5 = vpop.permute.xlu1 %130  }
  0xa1   :  { %310 = vst.msk [vmem:[%s709_s1 + $0x18] sm:$0x1] %vm3_vm5, %v124_v4   ;;  %312 = vst.msk [vmem:[%s709_s1 + $0xb] sm:$0x1] %vm3_vm5, %v131_v5  }
  0xa4   :  { %v137_v6 = vpop.permute.xlu0 %136   ;;  %v144_v7 = vpop.permute.xlu1 %143  }
  0xa5   :  { %313 = vst.msk [vmem:[%s709_s1 + $0x4] sm:$0x1] %vm3_vm5, %v137_v6   ;;  %315 = vst.msk [vmem:[%s709_s1 + $0x27] sm:$0x1] %vm3_vm5, %v144_v7  }
  0xa8   :  { %v151_v8 = vpop.permute.xlu0 %150   ;;  %v158_v9 = vpop.permute.xlu1 %157  }
  0xa9   :  { %317 = vst.msk [vmem:[%s709_s1 + $0x20] sm:$0x1] %vm3_vm5, %v151_v8   ;;  %319 = vst.msk [vmem:[%s709_s1 + $0x19] sm:$0x1] %vm3_vm5, %v158_v9  }
  0xac   :  { %v165_v10 = vpop.permute.xlu0 %164   ;;  %v171_v11 = vpop.permute.xlu1 %170  }
  0xad   :  { %321 = vst.msk [vmem:[%s709_s1 + $0xc] sm:$0x1] %vm3_vm5, %v165_v10   ;;  %322 = vst.msk [vmem:[%s709_s1 + $0x5] sm:$0x1] %vm3_vm5, %v171_v11  }
  0xb0   :  { %v178_v12 = vpop.permute.xlu0 %177   ;;  %v185_v13 = vpop.permute.xlu1 %184  }
  0xb1   :  { %324 = vst.msk [vmem:[%s709_s1 + $0x28] sm:$0x1] %vm3_vm5, %v178_v12   ;;  %326 = vst.msk [vmem:[%s709_s1 + $0x21] sm:$0x1] %vm3_vm5, %v185_v13  }
  0xb4   :  { %v192_v14 = vpop.permute.xlu0 %191   ;;  %v199_v15 = vpop.permute.xlu1 %198  }
  0xb5   :  { %328 = vst.msk [vmem:[%s709_s1 + $0x1a] sm:$0x1] %vm3_vm5, %v192_v14   ;;  %330 = vst.msk [vmem:[%s709_s1 + $0xd] sm:$0x1] %vm3_vm5, %v199_v15  }
  0xb8   :  { %v205_v16 = vpop.permute.xlu0 %204  }
  0xb9   :  { %331 = vst.msk [vmem:[%s709_s1 + $0x6] sm:$0x1] %vm3_vm5, %v205_v16  }

// kernel: spark_net_forward.1
= control target key start
LH: loop header
LB: loop body
LE: loop exit
PB: predicated region body
PF: predicated region fallthrough
CT: control target
= control target key end

     0   :  { %s3077_s9 = smov 19   ;;  %vm55_vm0 = vcmask 154624   ;;  %s3078_s18 = smov 127   ;;  %v3085_v21 = vmov 0.0   ;;  %vm86_vm1 = vcmask 1039360   ;;  %vm3087_vm3 = vmmov 1   ;;  %s4131_s0 = inlined_call_operand.vmem [shape: f32[8,768], index: 0, kind: input, shape index: {}]   ;;  %s4132_s1 = inlined_call_operand.vmem [shape: f32[8,72], index: 1, kind: input, shape index: {}]   ;;  %s4133_s7 = inlined_call_operand.vmem [shape: f32[1,768], index: 7, kind: input, shape index: {}]   ;;  %s4134_s2 = inlined_call_operand.vmem [shape: f32[8,8], index: 2, kind: input, shape index: {}]   ;;  %s4135_s3 = inlined_call_operand.vmem [shape: f32[8,72], index: 3, kind: input, shape index: {}]   ;;  %s4136_s4 = inlined_call_operand.vmem [shape: f32[8,72], index: 4, kind: input, shape index: {}]   ;;  %s4137_s5 = inlined_call_operand.vmem [shape: f32[8,8], index: 5, kind: input, shape index: {}]   ;;  %s4138_s6 = inlined_call_operand.vmem [shape: f32[8,72], index: 6, kind: input, shape index: {}]   ;;  %s4139_s8 = inlined_call_operand.vmem [shape: f32[8,768], index: 8, kind: output, shape index: {}]  }
   0x1   :  { %v32_v0 = vld [vmem:[%s4131_s0 + $0x10] sm:$0xff]  ;;  %v30_v1 = vld [vmem:[%s4131_s0] sm:$0xff]  ;;  %v33_v2 = vld [vmem:[%s4131_s0 + $0x18] sm:$0xff]  ;;  %s3079_s19 = smov 126   ;;  %s3080_s20 = smov 110   ;;  %356 = vmatprep.mubr.f32.mxu0 %v3085_v21  ;;  %427 = vmatprep.mubr.f32.mxu1 %v3085_v21  ;;  %vm113_vm5 = vcmask 1031168  }
   0x2   :  { %47 = vrot.lane.b32.xlu1 %v32_v0, %s3077_s9  ;;  %43 = vrot.lane.b32.xlu0 %v30_v1, %s3077_s9  ;;  %v31_v3 = vld [vmem:[%s4131_s0 + $0x8] sm:$0xff]  ;;  %v34_v5 = vld [vmem:[%s4131_s0 + $0x20] sm:$0xff]  ;;  %s3081_s21 = smov 109   ;;  %s3082_s22 = smov 108   ;;  %vm2418_vm2 = vmneg %vm55_vm0  ;;  %vm140_vm6 = vcmask 900096   ;;  %vm167_vm7 = vcmask 891904  }
   0x3   :  { %v35_v4 = vld [vmem:[%s4131_s0 + $0x28] sm:$0xff]  ;;  %s3083_s23 = smov 92   ;;  %s3084_s24 = smov 91   ;;  %vm3237_vm4 = vmpackc.low %vm3087_vm3, %vm2418_vm2  ;;  %vm194_vm8 = vcmask 883712   ;;  %vm221_vm9 = vcmask 752640   ;;  %vm248_vm10 = vcmask 744448  }
   0x4   :  { %s3086_s25 = smov 90   ;;  %vm275_vm11 = vcmask 736256   ;;  %vm288_vm12 = vcmask 588800   ;;  %vm549_vm13 = vcmask 64512  }
   0x6   :  { %49 = vrot.lane.b32.xlu1 %v33_v2, %s3077_s9  ;;  %45 = vrot.lane.b32.xlu0 %v31_v3, %s3077_s9 }
   0xa   :  { %53 = vrot.lane.b32.xlu1 %v35_v4, %s3077_s9  ;;  %51 = vrot.lane.b32.xlu0 %v34_v5, %s3077_s9 }
  0x74   :  { %v48_v6 = vpop.permute.xlu1 %47  ;;  %v3157_v7 = vpop.permute.xlu0 %43 }
  0x75   :  { %v68_v10 = vsel %vm55_vm0, 0.0, %v3157_v7 }
  0x78   :  { %v50_v8 = vpop.permute.xlu1 %49  ;;  %v46_v9 = vpop.permute.xlu0 %45 }
  0x79   :  { %v3162_v11 = vsel %vm55_vm0, %v48_v6, %v50_v8  ;;  %v3166_v12 = vsel %vm55_vm0, %v3157_v7, %v46_v9  ;;  %v3169_v13 = vsel %vm55_vm0, %v46_v9, %v48_v6 }
  0x7a   :  { %v2656_v14 = vpack.i.bf16 %v3162_v11, %v68_v10  ;;  %v2651_v15 = vpack.i.bf16 %v3169_v13, %v3166_v12 }
  0x7c   :  { %v54_v16 = vpop.permute.xlu1 %53  ;;  %2657 = vrot.lane.b32.xlu1 %v2656_v14, %s3078_s18  ;;  %2652 = vrot.lane.b32.xlu0 %v2651_v15, %s3078_s18  ;;  %v52_v17 = vpop.permute.xlu0 %51 }
  0x7d   :  { %v3177_v18 = vsel %vm55_vm0, %v50_v8, %v52_v17  ;;  %v3180_v19 = vsel %vm55_vm0, %v52_v17, %v54_v16  ;;  %v69_v22 = vsel %vm55_vm0, %v54_v16, 0.0 }
  0x7e   :  { %v2661_v20 = vpack.i.bf16 %v3180_v19, %v3177_v18  ;;  %v2736_v23 = vpack.i.bf16 %v69_v22, %v3180_v19 }
  0x80   :  { %2667 = vrot.lane.b32.xlu1 %v2651_v15, %s3079_s19  ;;  %2662 = vrot.lane.b32.xlu0 %v2661_v20, %s3078_s18 }
  0x84   :  { %2677 = vrot.lane.b32.xlu1 %v2656_v14, %s3079_s19  ;;  %2672 = vrot.lane.b32.xlu0 %v2651_v15, %s3080_s20 }
  0x88   :  { %2687 = vrot.lane.b32.xlu1 %v2661_v20, %s3079_s19  ;;  %2682 = vrot.lane.b32.xlu0 %v2656_v14, %s3080_s20 }
  0x8c   :  { %2697 = vrot.lane.b32.xlu1 %v2651_v15, %s3081_s21  ;;  %2692 = vrot.lane.b32.xlu0 %v2661_v20, %s3080_s20 }
  0x90   :  { %2707 = vrot.lane.b32.xlu1 %v2656_v14, %s3081_s21  ;;  %2702 = vrot.lane.b32.xlu0 %v2651_v15, %s3082_s22 }
  0x94   :  { %161 = vrot.lane.b32.xlu1 %v3177_v18, %s3081_s21  ;;  %2712 = vrot.lane.b32.xlu0 %v2656_v14, %s3082_s22 }
  0x98   :  { %2717 = vrot.lane.b32.xlu1 %v2651_v15, %s3083_s23  ;;  %188 = vrot.lane.b32.xlu0 %v3177_v18, %s3082_s22 }
  0x9c   :  { %2727 = vrot.lane.b32.xlu1 %v2656_v14, %s3083_s23  ;;  %2722 = vrot.lane.b32.xlu0 %v2651_v15, %s3084_s24 }
  0xa0   :  { %215 = vrot.lane.b32.xlu1 %v3177_v18, %s3083_s23  ;;  %2732 = vrot.lane.b32.xlu0 %v2656_v14, %s3084_s24 }
  0xa4   :  { %84 = vrot.lane.b32.xlu1 %v69_v22, %s3078_s18  ;;  %242 = vrot.lane.b32.xlu0 %v3177_v18, %s3084_s24 }
  0xa8   :  { %265 = vrot.lane.b32.xlu1 %v3169_v13, %s3086_s25  ;;  %263 = vrot.lane.b32.xlu0 %v3166_v12, %s3086_s25 }
  0xac   :  { %111 = vrot.lane.b32.xlu1 %v69_v22, %s3079_s19  ;;  %261 = vrot.lane.b32.xlu0 %v68_v10, %s3086_s25 }
  0xb0   :  { %267 = vrot.lane.b32.xlu1 %v3162_v11, %s3086_s25  ;;  %138 = vrot.lane.b32.xlu0 %v69_v22, %s3080_s20 }
  0xb4   :  { %2737 = vrot.lane.b32.xlu1 %v2736_v23, %s3081_s21  ;;  %269 = vrot.lane.b32.xlu0 %v3177_v18, %s3086_s25 }
  0xb8   :  { %2747 = vrot.lane.b32.xlu1 %v2736_v23, %s3083_s23  ;;  %2742 = vrot.lane.b32.xlu0 %v2736_v23, %s3082_s22 }
  0xbc   :  { %271 = vrot.lane.b32.xlu1 %v3180_v19, %s3086_s25  ;;  %2752 = vrot.lane.b32.xlu0 %v2736_v23, %s3084_s24 }
  0xc0   :  { %273 = vrot.lane.b32.xlu0 %v69_v22, %s3086_s25 }
  0xee   :  { %v2658_v24 = vpop.permute.xlu1 %2657  ;;  %v2653_v25 = vpop.permute.xlu0 %2652 }
  0xef   :  { %v2659_v26 = vunpack.i.l.bf16 %v2658_v24  ;;  %v2655_v27 = vunpack.i.h.bf16 %v2653_v25  ;;  %v2654_v28 = vunpack.i.l.bf16 %v2653_v25  ;;  %v2660_v29 = vunpack.i.h.bf16 %v2658_v24 }
  0xf1   :  { %v88_v30 = vsel %vm86_vm1, %v2654_v28, %v2655_v27  ;;  %v87_v31 = vsel %vm86_vm1, %v2659_v26, %v2654_v28  ;;  %v89_v38 = vsel %vm86_vm1, %v2655_v27, %v2660_v29 }
  0xf2   :  { %v2668_v32 = vpop.permute.xlu1 %2667  ;;  %v3233_v33 = vpop.permute.xlu0 %2662  ;;  %v2444_v34 = vpack.c.bf16 %v88_v30, %v3166_v12  ;;  %v2446_v35 = vpack.c.bf16 %v87_v31, %v3157_v7  ;;  %v2463_v47 = vpack.c.bf16 %v89_v38, %v3169_v13 }
  0xf3   :  { %v2664_v37 = vunpack.i.l.bf16 %v3233_v33  ;;  %v2670_v39 = vunpack.i.h.bf16 %v2668_v32  ;;  %v2669_v40 = vunpack.i.l.bf16 %v2668_v32 }
  0xf4   :  { %2445 = vmatprep.subr.bf16.mxu0 %v2444_v34 }
  0xf5   :  { %2448 = vmatpush1.bf16.msk.msra.mxu0 %vm3237_vm4, %v2446_v35  ;;  %v90_v41 = vsel %vm86_vm1, %v2660_v29, %v2664_v37  ;;  %v115_v49 = vsel %vm113_vm5, %v2669_v40, %v2670_v39 }
  0xf6   :  { %v2678_v42 = vpop.permute.xlu1 %2677  ;;  %v2673_v43 = vpop.permute.xlu0 %2672  ;;  %v2461_v44 = vpack.c.bf16 %v90_v41, %v3162_v11 }
  0xf7   :  { %v2675_v45 = vunpack.i.h.bf16 %v2673_v43  ;;  %v2674_v46 = vunpack.i.l.bf16 %v2673_v43  ;;  %v2679_v48 = vunpack.i.l.bf16 %v2678_v42  ;;  %v2680_v59 = vunpack.i.h.bf16 %v2678_v42 }
  0xf8   :  { %2462 = vmatprep.subr.bf16.mxu1 %v2461_v44 }
  0xf9   :  { %2464 = vmatpush1.bf16.msra.mxu1 %v2463_v47  ;;  %v142_v50 = vsel %vm140_vm6, %v2674_v46, %v2675_v45  ;;  %v114_v57 = vsel %vm113_vm5, %v2679_v48, %v2669_v40  ;;  %v116_v8 = vsel %vm113_vm5, %v2670_v39, %v2680_v59 }
  0xfa   :  { %v3252_v51 = vpop.permute.xlu1 %2687  ;;  %v2683_v52 = vpop.permute.xlu0 %2682  ;;  %v2449_v53 = vpack.c.bf16 %v142_v50, %v115_v49 }
  0xfb   :  { %v2684_v54 = vunpack.i.l.bf16 %v2683_v52  ;;  %v2685_v55 = vunpack.i.h.bf16 %v2683_v52  ;;  %v2689_v56 = vunpack.i.l.bf16 %v3252_v51 }
  0xfc   :  { %2450 = vmatprep.subr.bf16.mxu0 %v2449_v53 }
  0xfd   :  { %v141_v58 = vsel %vm140_vm6, %v2684_v54, %v2674_v46  ;;  %v143_v0 = vsel %vm140_vm6, %v2675_v45, %v2685_v55  ;;  %v117_v3 = vsel %vm113_vm5, %v2680_v59, %v2689_v56 }
  0xfe   :  { %v2698_v60 = vpop.permute.xlu1 %2697  ;;  %v3257_v61 = vpop.permute.xlu0 %2692  ;;  %v2451_v62 = vpack.c.bf16 %v141_v58, %v114_v57  ;;  %v2467_v11 = vpack.c.bf16 %v143_v0, %v116_v8 }
  0xff   :  { %v2694_v63 = vunpack.i.l.bf16 %v3257_v61  ;;  %v2700_v1 = vunpack.i.h.bf16 %v2698_v60  ;;  %v2699_v2 = vunpack.i.l.bf16 %v2698_v60 }
 0x100   :  { %2452 = vmatpush1.bf16.msra.mxu0 %v2451_v62 }
 0x101   :  { %v144_v4 = vsel %vm140_vm6, %v2685_v55, %v2694_v63  ;;  %v169_v13 = vsel %vm167_vm7, %v2699_v2, %v2700_v1 }
 0x102   :  { %v2708_v5 = vpop.permute.xlu1 %2707  ;;  %v2703_v6 = vpop.permute.xlu0 %2702  ;;  %v2465_v7 = vpack.c.bf16 %v144_v4, %v117_v3  ;;  %v2665_v3 = vunpack.i.h.bf16 %v3233_v33 }
 0x103   :  { %v2705_v9 = vunpack.i.h.bf16 %v2703_v6  ;;  %v2704_v10 = vunpack.i.l.bf16 %v2703_v6  ;;  %v2709_v12 = vunpack.i.l.bf16 %v2708_v5  ;;  %v2710_v23 = vunpack.i.h.bf16 %v2708_v5 }
 0x104   :  { %2466 = vmatprep.subr.bf16.mxu1 %v2465_v7 }
 0x105   :  { %2468 = vmatpush1.bf16.msra.mxu1 %v2467_v11  ;;  %v196_v14 = vsel %vm194_vm8, %v2704_v10, %v2705_v9  ;;  %v168_v24 = vsel %vm167_vm7, %v2709_v12, %v2699_v2  ;;  %v170_v34 = vsel %vm167_vm7, %v2700_v1, %v2710_v23 }
 0x106   :  { %v3270_v15 = vpop.permute.xlu1 %161  ;;  %v2713_v16 = vpop.permute.xlu0 %2712  ;;  %v2453_v17 = vpack.c.bf16 %v196_v14, %v169_v13  ;;  %v36_v13 = vld [vmem:[%s4132_s1] sm:$0xff] }
 0x107   :  { %v2715_v20 = vunpack.i.h.bf16 %v2713_v16  ;;  %v2714_v22 = vunpack.i.l.bf16 %v2713_v16  ;;  %v171_v30 = vsel %vm167_vm7, %v2710_v23, %v3270_v15 }
 0x108   :  { %2454 = vmatprep.subr.bf16.mxu0 %v2453_v17  ;;  %v2690_v17 = vunpack.i.h.bf16 %v3252_v51 }
 0x109   :  { %v195_v25 = vsel %vm194_vm8, %v2714_v22, %v2704_v10  ;;  %v197_v29 = vsel %vm194_vm8, %v2705_v9, %v2715_v20  ;;  %v91_v9 = vsel %vm86_vm1, %v2664_v37, %v2665_v3  ;;  %v2695_v10 = vunpack.i.h.bf16 %v3257_v61 }
 0x10a   :  { %v2718_v26 = vpop.permute.xlu1 %2717  ;;  %v3274_v27 = vpop.permute.xlu0 %188  ;;  %v2455_v28 = vpack.c.bf16 %v195_v25, %v168_v24  ;;  %v2471_v39 = vpack.c.bf16 %v197_v29, %v170_v34  ;;  %v2479_v33 = vpack.c.bf16 %v91_v9, %v3177_v18  ;;  %v118_v18 = vsel %vm113_vm5, %v2689_v56, %v2690_v17 }
 0x10b   :  { %v198_v31 = vsel %vm194_vm8, %v2715_v20, %v3274_v27  ;;  %v2720_v35 = vunpack.i.h.bf16 %v2718_v26  ;;  %v2719_v38 = vunpack.i.l.bf16 %v2718_v26  ;;  %v145_v37 = vsel %vm140_vm6, %v2694_v63, %v2695_v10 }
 0x10c   :  { %2456 = vmatpush1.bf16.msra.mxu0 %v2455_v28  ;;  %v2469_v32 = vpack.c.bf16 %v198_v31, %v171_v30  ;;  %v2483_v25 = vpack.c.bf16 %v145_v37, %v118_v18 }
 0x10d   :  { %v223_v45 = vsel %vm221_vm9, %v2719_v38, %v2720_v35 }
 0x10e   :  { %v2728_v40 = vpop.permute.xlu1 %2727  ;;  %v2723_v41 = vpop.permute.xlu0 %2722  ;;  %2470 = vmatprep.subr.bf16.mxu1 %v2469_v32 }
 0x10f   :  { %v2725_v42 = vunpack.i.h.bf16 %v2723_v41  ;;  %v2724_v43 = vunpack.i.l.bf16 %v2723_v41  ;;  %2472 = vmatpush1.bf16.msra.mxu1 %v2471_v39  ;;  %v2729_v44 = vunpack.i.l.bf16 %v2728_v40  ;;  %v2730_v53 = vunpack.i.h.bf16 %v2728_v40 }
 0x111   :  { %v250_v46 = vsel %vm248_vm10, %v2724_v43, %v2725_v42  ;;  %v222_v54 = vsel %vm221_vm9, %v2729_v44, %v2719_v38  ;;  %v224_v2 = vsel %vm221_vm9, %v2720_v35, %v2730_v53 }
 0x112   :  { %v3284_v47 = vpop.permute.xlu1 %215  ;;  %v2733_v48 = vpop.permute.xlu0 %2732  ;;  %v2457_v49 = vpack.c.bf16 %v250_v46, %v223_v45 }
 0x113   :  { %v2735_v50 = vunpack.i.h.bf16 %v2733_v48  ;;  %v2734_v52 = vunpack.i.l.bf16 %v2733_v48  ;;  %v225_v62 = vsel %vm221_vm9, %v2730_v53, %v3284_v47 }
 0x114   :  { %2458 = vmatprep.subr.bf16.mxu0 %v2457_v49 }
 0x115   :  { %v249_v55 = vsel %vm248_vm10, %v2734_v52, %v2724_v43  ;;  %v251_v60 = vsel %vm248_vm10, %v2725_v42, %v2735_v50 }
 0x116   :  { %v85_v57 = vpop.permute.xlu1 %84  ;;  %v3288_v58 = vpop.permute.xlu0 %242  ;;  %v2459_v59 = vpack.c.bf16 %v249_v55, %v222_v54  ;;  %v2475_v4 = vpack.c.bf16 %v251_v60, %v224_v2  ;;  %v29_v60 = vld [vmem:[%s4133_s7] sm:$0x3f] }
 0x117   :  { %v252_v0 = vsel %vm248_vm10, %v2735_v50, %v3288_v58  ;;  %v92_v8 = vsel %vm86_vm1, %v2665_v3, %v85_v57 }
 0x118   :  { %2460 = vmatpush1.bf16.msra.mxu0 %v2459_v59  ;;  %v2473_v1 = vpack.c.bf16 %v252_v0, %v225_v62  ;;  %v2477_v14 = vpack.c.bf16 %v92_v8, %v3180_v19  ;;  %v548_v8 = vld [vmem:[%s4134_s2] sm:$0xff] }
 0x11a   :  { %v266_v5 = vpop.permute.xlu1 %265  ;;  %v264_v6 = vpop.permute.xlu0 %263  ;;  %2474 = vmatprep.subr.bf16.mxu1 %v2473_v1 }
 0x11b   :  { %2476 = vmatpush1.bf16.msra.mxu1 %v2475_v4  ;;  %v277_v7 = vsel %vm275_vm11, %v264_v6, %v266_v5 }
 0x11c   :  { %308 = vmatprep.subr.mxu0 %v277_v7 }
 0x11e   :  { %v112_v11 = vpop.permute.xlu1 %111  ;;  %v262_v12 = vpop.permute.xlu0 %261 }
 0x11f   :  { %v276_v16 = vsel %vm275_vm11, %v262_v12, %v264_v6  ;;  %v119_v19 = vsel %vm113_vm5, %v2690_v17, %v112_v11 }
 0x120   :  { %309 = vmatpush1.msra.mxu0 %v276_v16 }
 0x121   :  { %2420 = vmatmul.mubr.msk.f32.vlgmr.msra.gmra.mrb[0].mxu0 %vm288_vm12, %v36_v13  ;;  %2478 = vmatprep.subr.bf16.mxu0 %v2477_v14 }
 0x122   :  { %v268_v20 = vpop.permute.xlu1 %267  ;;  %v139_v22 = vpop.permute.xlu0 %138  ;;  %2480 = vmatpush1.bf16.msra.mxu0 %v2479_v33  ;;  %498 = vmatprep.mubr.f32.mxu0 %v3085_v21 }
 0x123   :  { %v146_v23 = vsel %vm140_vm6, %v2695_v10, %v139_v22  ;;  %v278_v30 = vsel %vm275_vm11, %v266_v5, %v268_v20 }
 0x124   :  { %v2481_v24 = vpack.c.bf16 %v146_v23, %v119_v19 }
 0x126   :  { %v2738_v26 = vpop.permute.xlu1 %2737  ;;  %v270_v28 = vpop.permute.xlu0 %269  ;;  %2482 = vmatprep.subr.bf16.mxu0 %v2481_v24 }
 0x127   :  { %2484 = vmatpush1.bf16.msra.mxu0 %v2483_v25  ;;  %v279_v61 = vsel %vm275_vm11, %v268_v20, %v270_v28  ;;  %v2740_v63 = vunpack.i.h.bf16 %v2738_v26  ;;  %v2739_v29 = vunpack.i.l.bf16 %v2738_v26 }
 0x128   :  { %379 = vmatprep.subr.mxu1 %v279_v61 }
 0x129   :  { %380 = vmatpush1.msra.mxu1 %v278_v30  ;;  %v172_v34 = vsel %vm167_vm7, %v3270_v15, %v2739_v29  ;;  %v173_v35 = vsel %vm167_vm7, %v2739_v29, %v2740_v63 }
 0x12a   :  { %v2748_v31 = vpop.permute.xlu1 %2747  ;;  %v2743_v32 = vpop.permute.xlu0 %2742  ;;  %2421 = vmatmul.mubr.msk.f32.vlgmr.msra.gmra.mrb[0].mxu1 %vm288_vm12, %v36_v13 }
 0x12b   :  { %v2745_v51 = vunpack.i.h.bf16 %v2743_v32  ;;  %v2744_v56 = vunpack.i.l.bf16 %v2743_v32  ;;  %759 = vmatprep.mubr.f32.mxu1 %v3085_v21  ;;  %v2750_v38 = vunpack.i.h.bf16 %v2748_v31  ;;  %v2749_v39 = vunpack.i.l.bf16 %v2748_v31 }
 0x12d   :  { %v199_v40 = vsel %vm194_vm8, %v3274_v27, %v2744_v56  ;;  %v200_v41 = vsel %vm194_vm8, %v2744_v56, %v2745_v51  ;;  %v226_v48 = vsel %vm221_vm9, %v3284_v47, %v2749_v39  ;;  %v227_v49 = vsel %vm221_vm9, %v2749_v39, %v2750_v38 }
 0x12e   :  { %v2753_v42 = vpop.permute.xlu0 %2752  ;;  %v2485_v43 = vpack.c.bf16 %v200_v41, %v173_v35  ;;  %v2487_v44 = vpack.c.bf16 %v199_v40, %v172_v34  ;;  %v272_v54 = vpop.permute.xlu1 %271  ;;  %v512_v47 = vlaneseq }
 0x12f   :  { %v2755_v45 = vunpack.i.h.bf16 %v2753_v42  ;;  %v2754_v46 = vunpack.i.l.bf16 %v2753_v42  ;;  %v280_v57 = vsel %vm275_vm11, %v270_v28, %v272_v54 }
 0x130   :  { %2486 = vmatprep.subr.bf16.mxu0 %v2485_v43 }
 0x131   :  { %v253_v15 = vsel %vm248_vm10, %v3288_v58, %v2754_v46  ;;  %2488 = vmatpush1.bf16.msra.mxu0 %v2487_v44  ;;  %v254_v50 = vsel %vm248_vm10, %v2754_v46, %v2755_v45  ;;  %v513_v58 = vshrl.u32 %v512_v47, 7 }
 0x132   :  { %v274_v27 = vpop.permute.xlu0 %273  ;;  %v2489_v52 = vpack.c.bf16 %v254_v50, %v227_v49  ;;  %v2491_v53 = vpack.c.bf16 %v253_v15, %v226_v48 }
 0x133   :  { %v281_v55 = vsel %vm275_vm11, %v272_v54, %v274_v27  ;;  %v514_v59 = vsub.s32 0, %v513_v58  ;;  %v518_v62 = vsub.s32 1, %v513_v58  ;;  %v526_v9 = vsub.s32 3, %v513_v58 }
 0x134   :  { %2490 = vmatprep.subr.bf16.mxu0 %v2489_v52  ;;  %v522_v10 = vsub.s32 2, %v513_v58  ;;  %v530_v20 = vsub.s32 4, %v513_v58  ;;  %v534_v22 = vsub.s32 5, %v513_v58 }
 0x135   :  { %2492 = vmatpush1.bf16.msra.mxu0 %v2491_v53  ;;  %v3343_v0 = vrot.slane %v29_v60, %v514_v59  ;;  %v3345_v2 = vrot.slane %v29_v60, %v518_v62  ;;  %v3353_v12 = vrot.slane %v29_v60, %v526_v9 }
 0x136   :  { %450 = vmatprep.subr.mxu0 %v281_v55  ;;  %v3356_v14 = vrot.slane %v29_v60, %v522_v10  ;;  %v3362_v19 = vrot.slane %v29_v60, %v530_v20  ;;  %v3364_v18 = vrot.slane %v29_v60, %v534_v22 }
 0x139   :  { %451 = vmatpush1.msra.mxu0 %v280_v57 }
 0x13a   :  { %2422 = vmatmul.mubr.msk.f32.vlgmr.msra.gmra.mrb[2].mxu0 %vm288_vm12, %v36_v13 }
 0x13b   :  { %617 = vmatprep.mubr.f32.mxu0 %v3085_v21 }
 0x1f4   :  { %v358_v1 = vpop.f32.mrb[0].mxu0 }
 0x1f5   :  { %v505_v3 = vmax.f32 %v358_v1, 0.0  ;;  %v360_v4 = vpop.f32.mrb[1].mxu0 }
 0x1f6   :  { %v506_v5 = vmax.f32 %v360_v4, 0.0 }
 0x1f7   :  { %v542_v6 = vmul.f32 %v3343_v0, %v505_v3 }
 0x1f8   :  { %v543_v7 = vmul.f32 %v3345_v2, %v506_v5 }
 0x1fa   :  { %553 = vmatprep.subr.mxu0 %v543_v7 }
 0x1fb   :  { %554 = vmatpush1.msra.mxu0 %v542_v6 }
 0x1fc   :  { %2423 = vmatmul.mubr.msk.f32.vlgmr.msra.gmra.mrb[4].mxu0 %vm549_vm13, %v548_v8 }
 0x1fd   :  { %v429_v11 = vpop.f32.mrb[0].mxu1  ;;  %688 = vmatprep.mubr.f32.mxu0 %v3085_v21 }
 0x1fe   :  { %v507_v13 = vmax.f32 %v429_v11, 0.0  ;;  %v431_v16 = vpop.f32.mrb[1].mxu1 }
 0x1ff   :  { %v508_v17 = vmax.f32 %v431_v16, 0.0 }
 0x200   :  { %v544_v37 = vmul.f32 %v3356_v14, %v507_v13 }
 0x201   :  { %v545_v33 = vmul.f32 %v3353_v12, %v508_v17 }
 0x203   :  { %624 = vmatprep.subr.mxu0 %v545_v33 }
 0x204   :  { %625 = vmatpush1.msra.mxu0 %v544_v37 }
 0x205   :  { %2424 = vmatmul.mubr.msk.f32.vlgmr.msra.gmra.mrb[6].mxu0 %vm549_vm13, %v548_v8 }
 0x206   :  { %1153 = vmatprep.mubr.f32.mxu0 %v3085_v21 }
 0x20d   :  { %v500_v23 = vpop.f32.mrb[2].mxu0 }
 0x20e   :  { %v509_v24 = vmax.f32 %v500_v23, 0.0  ;;  %v502_v25 = vpop.f32.mrb[3].mxu0 }
 0x20f   :  { %v510_v26 = vmax.f32 %v502_v25, 0.0 }
 0x210   :  { %v546_v28 = vmul.f32 %v3362_v19, %v509_v24 }
 0x211   :  { %v547_v61 = vmul.f32 %v3364_v18, %v510_v26 }
 0x213   :  { %695 = vmatprep.subr.mxu1 %v547_v61 }
 0x214   :  { %696 = vmatpush1.msra.mxu1 %v546_v28 }
 0x215   :  { %2425 = vmatmul.mubr.msk.f32.vlgmr.msra.gmra.mrb[2].mxu1 %vm549_vm13, %v548_v8 }
 0x216   :  { %1082 = vmatprep.mubr.f32.mxu1 %v3085_v21 }
 0x2cf   :  { %v619_v63 = vpop.f32.mrb[4].mxu0 }
 0x2d0   :  { %v766_v29 = vmax.f32 %v619_v63, 0.0  ;;  %v621_v30 = vpop.f32.mrb[5].mxu0 }
 0x2d1   :  { %v767_v31 = vmax.f32 %v621_v30, 0.0 }
 0x2d2   :  { %779 = vrot.lane.b32.xlu1 %v766_v29, %s3077_s9 }
 0x2d3   :  { %781 = vrot.lane.b32.xlu0 %v767_v31, %s3077_s9 }
 0x2d8   :  { %v690_v32 = vpop.f32.mrb[6].mxu0 }
 0x2d9   :  { %v768_v51 = vmax.f32 %v690_v32, 0.0  ;;  %v692_v56 = vpop.f32.mrb[7].mxu0 }
 0x2da   :  { %v769_v34 = vmax.f32 %v692_v56, 0.0 }
 0x2db   :  { %783 = vrot.lane.b32.xlu1 %v768_v51, %s3077_s9 }
 0x2dc   :  { %785 = vrot.lane.b32.xlu0 %v769_v34, %s3077_s9 }
 0x2e8   :  { %v761_v35 = vpop.f32.mrb[2].mxu1 }
 0x2e9   :  { %v770_v38 = vmax.f32 %v761_v35, 0.0  ;;  %v763_v39 = vpop.f32.mrb[3].mxu1 }
 0x2ea   :  { %v771_v40 = vmax.f32 %v763_v39, 0.0 }
 0x2eb   :  { %787 = vrot.lane.b32.xlu1 %v770_v38, %s3077_s9 }
 0x2ec   :  { %789 = vrot.lane.b32.xlu0 %v771_v40, %s3077_s9 }
 0x344   :  { %v3376_v41 = vpop.permute.xlu1 %779 }
 0x345   :  { %v803_v42 = vsel %vm55_vm0, 0.0, %v3376_v41  ;;  %v782_v43 = vpop.permute.xlu0 %781 }
 0x346   :  { %989 = vrot.lane.b32.xlu1 %v803_v42, %s3086_s25  ;;  %963 = vrot.lane.b32.xlu0 %v803_v42, %s3084_s24  ;;  %v791_v44 = vsel %vm55_vm0, %v3376_v41, %v782_v43 }
 0x34a   :  { %991 = vrot.lane.b32.xlu1 %v791_v44, %s3086_s25 }
 0x34d   :  { %v784_v45 = vpop.permute.xlu1 %783 }
 0x34e   :  { %v3386_v46 = vsel %vm55_vm0, %v782_v43, %v784_v45  ;;  %v786_v15 = vpop.permute.xlu0 %785 }
 0x34f   :  { %v2756_v48 = vpack.i.bf16 %v3386_v46, %v791_v44  ;;  %v3396_v49 = vsel %vm55_vm0, %v784_v45, %v786_v15 }
 0x350   :  { %v2796_v50 = vpack.i.bf16 %v3396_v49, %v803_v42 }
 0x351   :  { %2757 = vrot.lane.b32.xlu1 %v2756_v48, %s3078_s18  ;;  %2767 = vrot.lane.b32.xlu0 %v2756_v48, %s3080_s20 }
 0x355   :  { %2762 = vrot.lane.b32.xlu1 %v2756_v48, %s3079_s19  ;;  %2777 = vrot.lane.b32.xlu0 %v2756_v48, %s3082_s22 }
 0x359   :  { %2772 = vrot.lane.b32.xlu1 %v2756_v48, %s3081_s21  ;;  %2787 = vrot.lane.b32.xlu0 %v2756_v48, %s3084_s24 }
 0x35d   :  { %2782 = vrot.lane.b32.xlu1 %v2756_v48, %s3083_s23  ;;  %993 = vrot.lane.b32.xlu0 %v3386_v46, %s3086_s25  ;;  %v788_v27 = vpop.permute.xlu1 %787 }
 0x35e   :  { %v3407_v52 = vsel %vm55_vm0, %v786_v15, %v788_v27  ;;  %v790_v53 = vpop.permute.xlu0 %789 }
 0x35f   :  { %v2821_v54 = vpack.i.bf16 %v3407_v52, %v3396_v49  ;;  %v3414_v55 = vsel %vm55_vm0, %v788_v27, %v790_v53  ;;  %v804_v57 = vsel %vm55_vm0, %v790_v53, 0.0 }
 0x360   :  { %v2836_v47 = vpack.i.bf16 %v3414_v55, %v3407_v52  ;;  %v2856_v58 = vpack.i.bf16 %v804_v57, %v3414_v55 }
 0x361   :  { %2797 = vrot.lane.b32.xlu1 %v2796_v50, %s3079_s19  ;;  %2792 = vrot.lane.b32.xlu0 %v2796_v50, %s3078_s18 }
 0x365   :  { %2807 = vrot.lane.b32.xlu1 %v2796_v50, %s3081_s21  ;;  %2802 = vrot.lane.b32.xlu0 %v2796_v50, %s3080_s20 }
 0x369   :  { %2817 = vrot.lane.b32.xlu1 %v2796_v50, %s3083_s23  ;;  %2812 = vrot.lane.b32.xlu0 %v2796_v50, %s3082_s22 }
 0x36d   :  { %2822 = vrot.lane.b32.xlu1 %v2821_v54, %s3084_s24  ;;  %819 = vrot.lane.b32.xlu0 %v804_v57, %s3078_s18 }
 0x371   :  { %2837 = vrot.lane.b32.xlu0 %v2836_v47, %s3080_s20  ;;  %2827 = vrot.lane.b32.xlu1 %v2836_v47, %s3078_s18 }
 0x375   :  { %845 = vrot.lane.b32.xlu0 %v804_v57, %s3079_s19  ;;  %2832 = vrot.lane.b32.xlu1 %v2836_v47, %s3079_s19 }
 0x379   :  { %2842 = vrot.lane.b32.xlu0 %v2836_v47, %s3081_s21  ;;  %871 = vrot.lane.b32.xlu1 %v804_v57, %s3080_s20 }
 0x37d   :  { %897 = vrot.lane.b32.xlu0 %v804_v57, %s3081_s21  ;;  %2847 = vrot.lane.b32.xlu1 %v2836_v47, %s3082_s22 }
 0x381   :  { %2852 = vrot.lane.b32.xlu0 %v2836_v47, %s3083_s23  ;;  %923 = vrot.lane.b32.xlu1 %v804_v57, %s3082_s22 }
 0x385   :  { %949 = vrot.lane.b32.xlu0 %v804_v57, %s3083_s23  ;;  %2857 = vrot.lane.b32.xlu1 %v2856_v58, %s3084_s24 }
 0x389   :  { %995 = vrot.lane.b32.xlu0 %v3396_v49, %s3086_s25  ;;  %997 = vrot.lane.b32.xlu1 %v3407_v52, %s3086_s25 }
 0x38d   :  { %999 = vrot.lane.b32.xlu0 %v3414_v55, %s3086_s25  ;;  %1001 = vrot.lane.b32.xlu1 %v804_v57, %s3086_s25 }
 0x3b8   :  { %v3441_v59 = vpop.permute.xlu1 %989  ;;  %v3443_v60 = vpop.permute.xlu0 %963 }
 0x3bc   :  { %v3445_v62 = vpop.permute.xlu1 %991 }
 0x3c3   :  { %v3447_v1 = vpop.permute.xlu1 %2757  ;;  %v3449_v3 = vpop.permute.xlu0 %2767 }
 0x3c4   :  { %v2760_v4 = vunpack.i.h.bf16 %v3447_v1  ;;  %v2759_v5 = vunpack.i.l.bf16 %v3447_v1  ;;  %v2770_v37 = vunpack.i.h.bf16 %v3449_v3  ;;  %v2769_v20 = vunpack.i.l.bf16 %v3449_v3 }
 0x3c6   :  { %v822_v6 = vsel %vm86_vm1, %v2759_v5, %v2760_v4  ;;  %v874_v56 = vsel %vm140_vm6, %v2769_v20, %v2770_v37 }
 0x3c7   :  { %v3456_v7 = vpop.permute.xlu1 %2762  ;;  %v3458_v8 = vpop.permute.xlu0 %2777  ;;  %v2493_v9 = vpack.c.bf16 %v822_v6, %v791_v44 }
 0x3c8   :  { %v2765_v17 = vunpack.i.h.bf16 %v3456_v7  ;;  %v2764_v33 = vunpack.i.l.bf16 %v3456_v7  ;;  %v2780_v29 = vunpack.i.h.bf16 %v3458_v8  ;;  %v2779_v30 = vunpack.i.l.bf16 %v3458_v8 }
 0x3c9   :  { %2494 = vmatprep.subr.bf16.mxu1 %v2493_v9 }
 0x3ca   :  { %v848_v28 = vsel %vm113_vm5, %v2764_v33, %v2765_v17  ;;  %v926_v27 = vsel %vm194_vm8, %v2779_v30, %v2780_v29 }
 0x3cb   :  { %v3460_v10 = vpop.permute.xlu1 %2772  ;;  %v3462_v11 = vpop.permute.xlu0 %2787  ;;  %v2498_v35 = vpack.c.bf16 %v874_v56, %v848_v28 }
 0x3cc   :  { %v2775_v25 = vunpack.i.h.bf16 %v3460_v10  ;;  %v2774_v26 = vunpack.i.l.bf16 %v3460_v10  ;;  %v2790_v44 = vunpack.i.h.bf16 %v3462_v11  ;;  %v2789_v45 = vunpack.i.l.bf16 %v3462_v11 }
 0x3ce   :  { %v900_v40 = vsel %vm167_vm7, %v2774_v26, %v2775_v25 }
 0x3cf   :  { %v3464_v13 = vpop.permute.xlu1 %2782  ;;  %v3466_v16 = vpop.permute.xlu0 %993  ;;  %v2502_v57 = vpack.c.bf16 %v926_v27, %v900_v40 }
 0x3d0   :  { %v2785_v38 = vunpack.i.h.bf16 %v3464_v13  ;;  %v2784_v39 = vunpack.i.l.bf16 %v3464_v13 }
 0x3d2   :  { %v952_v47 = vsel %vm221_vm9, %v2784_v39, %v2785_v38 }
 0x3d3   :  { %v3472_v22 = vpop.permute.xlu1 %2797  ;;  %v2793_v23 = vpop.permute.xlu0 %2792 }
 0x3d4   :  { %v2794_v24 = vunpack.i.l.bf16 %v2793_v23  ;;  %v2799_v61 = vunpack.i.l.bf16 %v3472_v22 }
 0x3d6   :  { %v821_v63 = vsel %vm86_vm1, %v2794_v24, %v2759_v5 }
 0x3d7   :  { %v2495_v31 = vpack.c.bf16 %v821_v63, %v3376_v41  ;;  %v3484_v32 = vpop.permute.xlu1 %2807  ;;  %v3486_v51 = vpop.permute.xlu0 %2802  ;;  %v847_v41 = vsel %vm113_vm5, %v2799_v61, %v2764_v33  ;;  %v2795_v61 = vunpack.i.h.bf16 %v2793_v23  ;;  %v977_v63 = vsel %vm248_vm10, %v3443_v60, %v2789_v45 }
 0x3d8   :  { %v2804_v34 = vunpack.i.l.bf16 %v3486_v51  ;;  %v2809_v42 = vunpack.i.l.bf16 %v3484_v32  ;;  %v2805_v40 = vunpack.i.h.bf16 %v3486_v51  ;;  %v1004_v23 = vsel %vm275_vm11, %v3445_v62, %v3466_v16 }
 0x3d9   :  { %2497 = vmatpush1.bf16.msk.msra.mxu1 %vm3237_vm4, %v2495_v31 }
 0x3da   :  { %v873_v43 = vsel %vm140_vm6, %v2804_v34, %v2769_v20  ;;  %2499 = vmatprep.subr.bf16.mxu1 %v2498_v35  ;;  %v899_v58 = vsel %vm167_vm7, %v2809_v42, %v2774_v26  ;;  %v978_v20 = vsel %vm248_vm10, %v2789_v45, %v2790_v44  ;;  %v823_v35 = vsel %vm86_vm1, %v2760_v4, %v2795_v61 }
 0x3db   :  { %v3504_v48 = vpop.permute.xlu1 %2817  ;;  %v3506_v15 = vpop.permute.xlu0 %2812  ;;  %v2500_v50 = vpack.c.bf16 %v873_v43, %v847_v41  ;;  %v2506_v28 = vpack.c.bf16 %v978_v20, %v952_v47  ;;  %v2800_v42 = vunpack.i.h.bf16 %v3472_v22  ;;  %v3546_v22 = vld [vmem:[%s4135_s3] sm:$0xff] }
 0x3dc   :  { %v2819_v53 = vunpack.i.l.bf16 %v3504_v48  ;;  %v2814_v54 = vunpack.i.l.bf16 %v3506_v15  ;;  %v2815_v7 = vunpack.i.h.bf16 %v3506_v15 }
 0x3dd   :  { %2501 = vmatpush1.bf16.msra.mxu1 %v2500_v50 }
 0x3de   :  { %v925_v5 = vsel %vm194_vm8, %v2814_v54, %v2779_v30  ;;  %2503 = vmatprep.subr.bf16.mxu1 %v2502_v57  ;;  %v951_v24 = vsel %vm221_vm9, %v2819_v53, %v2784_v39  ;;  %v1003_v53 = vsel %vm275_vm11, %v3441_v59, %v3445_v62  ;;  %v2512_v54 = vpack.c.bf16 %v823_v35, %v3386_v46 }
 0x3df   :  { %v3518_v6 = vpop.permute.xlu1 %2822  ;;  %v820_v9 = vpop.permute.xlu0 %819  ;;  %v2504_v33 = vpack.c.bf16 %v925_v5, %v899_v58  ;;  %v2508_v31 = vpack.c.bf16 %v977_v63, %v951_v24  ;;  %v875_v57 = vsel %vm140_vm6, %v2770_v37, %v2805_v40  ;;  %v849_v62 = vsel %vm113_vm5, %v2765_v17, %v2800_v42 }
 0x3e0   :  { %v2824_v15 = vunpack.i.l.bf16 %v3518_v6 }
 0x3e1   :  { %2505 = vmatpush1.bf16.msra.mxu1 %v2504_v33 }
 0x3e2   :  { %2507 = vmatprep.subr.bf16.mxu1 %v2506_v28  ;;  %v2810_v28 = vunpack.i.h.bf16 %v3484_v32 }
 0x3e3   :  { %v2828_v26 = vpop.permute.xlu1 %2827  ;;  %v2838_v30 = vpop.permute.xlu0 %2837 }
 0x3e4   :  { %v2830_v56 = vunpack.i.h.bf16 %v2828_v26  ;;  %v2829_v34 = vunpack.i.l.bf16 %v2828_v26  ;;  %v2839_v39 = vunpack.i.l.bf16 %v2838_v30  ;;  %v901_v32 = vsel %vm167_vm7, %v2775_v25, %v2810_v28 }
 0x3e5   :  { %2509 = vmatpush1.bf16.msra.mxu1 %v2508_v31  ;;  %v927_v31 = vsel %vm194_vm8, %v2780_v29, %v2815_v7 }
 0x3e6   :  { %1034 = vmatprep.subr.mxu1 %v1004_v23  ;;  %v824_v60 = vsel %vm86_vm1, %v2795_v61, %v2829_v34  ;;  %v826_v41 = vsel %vm86_vm1, %v2830_v56, %v820_v9  ;;  %v825_v43 = vsel %vm86_vm1, %v2829_v34, %v2830_v56  ;;  %v876_v46 = vsel %vm140_vm6, %v2805_v40, %v2839_v39 }
 0x3e7   :  { %v2833_v1 = vpop.permute.xlu1 %2832  ;;  %v846_v45 = vpop.permute.xlu0 %845  ;;  %v2510_v4 = vpack.c.bf16 %v824_v60, %v3396_v49  ;;  %v2526_v51 = vpack.c.bf16 %v826_v41, %v3414_v55  ;;  %v2840_v49 = vunpack.i.h.bf16 %v2838_v30  ;;  %v2528_v55 = vpack.c.bf16 %v825_v43, %v3407_v52 }
 0x3e8   :  { %v2835_v50 = vunpack.i.h.bf16 %v2833_v1  ;;  %v2834_v27 = vunpack.i.l.bf16 %v2833_v1  ;;  %v2516_v9 = vpack.c.bf16 %v875_v57, %v849_v62  ;;  %v2825_v34 = vunpack.i.h.bf16 %v3518_v6 }
 0x3e9   :  { %1035 = vmatpush1.msra.mxu1 %v1003_v53  ;;  %2511 = vmatprep.subr.bf16.mxu0 %v2510_v4  ;;  %v877_v17 = vsel %vm140_vm6, %v2839_v39, %v2840_v49  ;;  %v2820_v23 = vunpack.i.h.bf16 %v3504_v48  ;;  %v2520_v43 = vpack.c.bf16 %v927_v31, %v901_v32  ;;  %v979_v1 = vsel %vm248_vm10, %v2790_v44, %v2824_v15 }
 0x3ea   :  { %2513 = vmatpush1.bf16.msra.mxu0 %v2512_v54  ;;  %2527 = vmatprep.subr.bf16.mxu1 %v2526_v51  ;;  %v850_v59 = vsel %vm113_vm5, %v2800_v42, %v2834_v27  ;;  %v851_v47 = vsel %vm113_vm5, %v2834_v27, %v2835_v50  ;;  %v852_v52 = vsel %vm113_vm5, %v2835_v50, %v846_v45 }
 0x3eb   :  { %v872_v3 = vpop.permute.xlu1 %871  ;;  %v2843_v58 = vpop.permute.xlu0 %2842  ;;  %2428 = vmatmul.mubr.msk.f32.vlgmr.msra.gmra.mrb[4].mxu1 %vm288_vm12, %v3546_v22  ;;  %v2514_v37 = vpack.c.bf16 %v876_v46, %v850_v59  ;;  %v2532_v20 = vpack.c.bf16 %v877_v17, %v851_v47  ;;  %v980_v51 = vsel %vm248_vm10, %v2824_v15, %v2825_v34  ;;  %v953_v50 = vsel %vm221_vm9, %v2785_v38, %v2820_v23 }
 0x3ec   :  { %v878_v5 = vsel %vm140_vm6, %v2840_v49, %v872_v3  ;;  %2529 = vmatpush1.bf16.msra.mxu1 %v2528_v55  ;;  %1224 = vmatprep.mubr.f32.mxu1 %v3085_v21  ;;  %v2844_v24 = vunpack.i.l.bf16 %v2843_v58  ;;  %v2845_v56 = vunpack.i.h.bf16 %v2843_v58  ;;  %v2524_v57 = vpack.c.bf16 %v979_v1, %v953_v50  ;;  %v3076_v1 = vld [vmem:[%s4131_s0 + $0x28] sm:$0xff] }
 0x3ed   :  { %v2530_v33 = vpack.c.bf16 %v878_v5, %v852_v52  ;;  %2515 = vmatprep.subr.bf16.mxu0 %v2514_v37 }
 0x3ee   :  { %2517 = vmatpush1.bf16.msra.mxu0 %v2516_v9  ;;  %v902_v35 = vsel %vm167_vm7, %v2810_v28, %v2844_v24  ;;  %v903_v10 = vsel %vm167_vm7, %v2844_v24, %v2845_v56  ;;  %v3071_v28 = vld [vmem:[%s4131_s0] sm:$0xff] }
 0x3ef   :  { %v2848_v61 = vpop.permute.xlu1 %2847  ;;  %v898_v63 = vpop.permute.xlu0 %897  ;;  %2531 = vmatprep.subr.bf16.mxu1 %v2530_v33 }
 0x3f0   :  { %v2850_v26 = vunpack.i.h.bf16 %v2848_v61  ;;  %v2849_v30 = vunpack.i.l.bf16 %v2848_v61  ;;  %2533 = vmatpush1.bf16.msra.mxu1 %v2532_v20  ;;  %v904_v41 = vsel %vm167_vm7, %v2845_v56, %v898_v63  ;;  %v3072_v63 = vld [vmem:[%s4131_s0 + $0x8] sm:$0xff] }
 0x3f2   :  { %v928_v40 = vsel %vm194_vm8, %v2815_v7, %v2849_v30  ;;  %v929_v39 = vsel %vm194_vm8, %v2849_v30, %v2850_v26 }
 0x3f3   :  { %v924_v8 = vpop.permute.xlu1 %923  ;;  %v2853_v60 = vpop.permute.xlu0 %2852  ;;  %v2518_v29 = vpack.c.bf16 %v928_v40, %v902_v35  ;;  %v2536_v48 = vpack.c.bf16 %v929_v39, %v903_v10 }
 0x3f4   :  { %v930_v42 = vsel %vm194_vm8, %v2850_v26, %v924_v8  ;;  %v2854_v6 = vunpack.i.l.bf16 %v2853_v60  ;;  %v2855_v45 = vunpack.i.h.bf16 %v2853_v60  ;;  %v3074_v60 = vld [vmem:[%s4131_s0 + $0x18] sm:$0xff] }
 0x3f5   :  { %v2534_v25 = vpack.c.bf16 %v930_v42, %v904_v41  ;;  %2519 = vmatprep.subr.bf16.mxu0 %v2518_v29 }
 0x3f6   :  { %2521 = vmatpush1.bf16.msra.mxu0 %v2520_v43  ;;  %v954_v4 = vsel %vm221_vm9, %v2820_v23, %v2854_v6  ;;  %v955_v49 = vsel %vm221_vm9, %v2854_v6, %v2855_v45  ;;  %v3073_v23 = vld [vmem:[%s4131_s0 + $0x10] sm:$0xff]  ;;  %v3075_v6 = vld [vmem:[%s4131_s0 + $0x20] sm:$0xff] }
 0x3f7   :  { %v2858_v27 = vpop.permute.xlu1 %2857  ;;  %v950_v53 = vpop.permute.xlu0 %949  ;;  %2535 = vmatprep.subr.bf16.mxu1 %v2534_v25  ;;  %v2522_v11 = vpack.c.bf16 %v980_v51, %v954_v4 }
 0x3f8   :  { %v2860_v44 = vunpack.i.h.bf16 %v2858_v27  ;;  %v2859_v54 = vunpack.i.l.bf16 %v2858_v27  ;;  %2537 = vmatpush1.bf16.msra.mxu1 %v2536_v48  ;;  %v956_v46 = vsel %vm221_vm9, %v2855_v45, %v950_v53 }
 0x3f9   :  { %2523 = vmatprep.subr.bf16.mxu0 %v2522_v11 }
 0x3fa   :  { %v981_v55 = vsel %vm248_vm10, %v2825_v34, %v2859_v54  ;;  %v982_v59 = vsel %vm248_vm10, %v2859_v54, %v2860_v44  ;;  %2525 = vmatpush1.bf16.msra.mxu0 %v2524_v57 }
 0x3fb   :  { %v2540_v13 = vpack.c.bf16 %v981_v55, %v955_v49  ;;  %v2538_v38 = vpack.c.bf16 %v982_v59, %v956_v46  ;;  %v998_v62 = vpop.permute.xlu1 %997  ;;  %v996_v47 = vpop.permute.xlu0 %995 }
 0x3fc   :  { %v1005_v3 = vsel %vm275_vm11, %v3466_v16, %v996_v47  ;;  %v1006_v58 = vsel %vm275_vm11, %v996_v47, %v998_v62 }
 0x3fd   :  { %1105 = vmatprep.subr.mxu0 %v1006_v58  ;;  %2539 = vmatprep.subr.bf16.mxu1 %v2538_v38 }
 0x3fe   :  { %1106 = vmatpush1.msra.mxu0 %v1005_v3  ;;  %2541 = vmatpush1.bf16.msra.mxu1 %v2540_v13 }
 0x3ff   :  { %v1002_v37 = vpop.permute.xlu1 %1001  ;;  %v1000_v52 = vpop.permute.xlu0 %999  ;;  %2429 = vmatmul.mubr.msk.f32.vlgmr.msra.gmra.mrb[8].mxu0 %vm288_vm12, %v3546_v22 }
 0x400   :  { %v1007_v5 = vsel %vm275_vm11, %v998_v62, %v1000_v52  ;;  %v1008_v9 = vsel %vm275_vm11, %v1000_v52, %v1002_v37  ;;  %1559 = vmatprep.mubr.f32.mxu0 %v3085_v21 }
 0x401   :  { %1176 = vmatprep.subr.mxu1 %v1008_v9 }
 0x402   :  { %1177 = vmatpush1.msra.mxu1 %v1007_v5 }
 0x403   :  { %2430 = vmatmul.mubr.msk.f32.vlgmr.msra.gmra.mrb[6].mxu1 %vm288_vm12, %v3546_v22 }
 0x404   :  { %1630 = vmatprep.mubr.f32.mxu1 %v3085_v21 }
 0x4be   :  { %v1084_v16 = vpop.f32.mrb[4].mxu1 }
 0x4bf   :  { %v1231_v7 = vmax.f32 %v1084_v16, 0.0  ;;  %v1086_v17 = vpop.f32.mrb[5].mxu1 }
 0x4c0   :  { %v1232_v33 = vmax.f32 %v1086_v17, 0.0 }
 0x4c1   :  { %v1237_v20 = vmul.f32 %v1231_v7, %v3343_v0 }
 0x4c2   :  { %v1238_v24 = vmul.f32 %v1232_v33, %v3345_v2 }
 0x4c3   :  { %v1243_v61 = vadd.f32 %v3071_v28, %v1237_v20 }
 0x4c4   :  { %v1244_v22 = vadd.f32 %v3072_v63, %v1238_v24 }
 0x4c5   :  { %1256 = vrot.lane.b32.xlu0 %v1243_v61, %s3077_s9 }
 0x4c6   :  { %1258 = vrot.lane.b32.xlu1 %v1244_v22, %s3077_s9 }
 0x4d2   :  { %v1155_v26 = vpop.f32.mrb[8].mxu0 }
 0x4d3   :  { %v1233_v30 = vmax.f32 %v1155_v26, 0.0  ;;  %v1157_v31 = vpop.f32.mrb[9].mxu0 }
 0x4d4   :  { %v1234_v15 = vmax.f32 %v1157_v31, 0.0 }
 0x4d5   :  { %v1239_v56 = vmul.f32 %v1233_v30, %v3356_v14 }
 0x4d6   :  { %v1240_v34 = vmul.f32 %v1234_v15, %v3353_v12  ;;  %v1226_v35 = vpop.f32.mrb[6].mxu1 }
 0x4d7   :  { %v1235_v40 = vmax.f32 %v1226_v35, 0.0  ;;  %v1228_v32 = vpop.f32.mrb[7].mxu1  ;;  %v1245_v39 = vadd.f32 %v3073_v23, %v1239_v56 }
 0x4d8   :  { %v1236_v8 = vmax.f32 %v1228_v32, 0.0  ;;  %v1246_v29 = vadd.f32 %v3074_v60, %v1240_v34 }
 0x4d9   :  { %v1241_v41 = vmul.f32 %v1235_v40, %v3362_v19  ;;  %1260 = vrot.lane.b32.xlu0 %v1245_v39, %s3077_s9 }
 0x4da   :  { %v1242_v42 = vmul.f32 %v1236_v8, %v3364_v18  ;;  %1262 = vrot.lane.b32.xlu1 %v1246_v29, %s3077_s9 }
 0x4db   :  { %v1247_v43 = vadd.f32 %v3075_v6, %v1241_v41 }
 0x4dc   :  { %v1248_v10 = vadd.f32 %v3076_v1, %v1242_v42 }
 0x4dd   :  { %1264 = vrot.lane.b32.xlu0 %v1247_v43, %s3077_s9 }
 0x4de   :  { %1266 = vrot.lane.b32.xlu1 %v1248_v10, %s3077_s9 }
 0x537   :  { %v3634_v25 = vpop.permute.xlu0 %1256 }
 0x538   :  { %v1259_v48 = vpop.permute.xlu1 %1258  ;;  %v1280_v11 = vsel %vm55_vm0, 0.0, %v3634_v25 }
 0x539   :  { %v1268_v4 = vsel %vm55_vm0, %v3634_v25, %v1259_v48 }
 0x54b   :  { %v1261_v45 = vpop.permute.xlu0 %1260 }
 0x54c   :  { %v3639_v51 = vsel %vm55_vm0, %v1259_v48, %v1261_v45  ;;  %v1263_v27 = vpop.permute.xlu1 %1262 }
 0x54d   :  { %v2861_v50 = vpack.i.bf16 %v3639_v51, %v1268_v4  ;;  %v3647_v53 = vsel %vm55_vm0, %v1261_v45, %v1263_v27 }
 0x54e   :  { %v2896_v44 = vpack.i.bf16 %v3647_v53, %v1280_v11 }
 0x54f   :  { %2862 = vrot.lane.b32.xlu0 %v2861_v50, %s3078_s18  ;;  %2867 = vrot.lane.b32.xlu1 %v2861_v50, %s3079_s19  ;;  %v1265_v54 = vpop.permute.xlu0 %1264 }
 0x550   :  { %v3661_v57 = vsel %vm55_vm0, %v1263_v27, %v1265_v54  ;;  %v1267_v49 = vpop.permute.xlu1 %1266 }
 0x551   :  { %v3667_v55 = vsel %vm55_vm0, %v1265_v54, %v1267_v49  ;;  %v1281_v46 = vsel %vm55_vm0, %v1267_v49, 0.0 }
 0x552   :  { %v2926_v59 = vpack.i.bf16 %v3667_v55, %v3661_v57  ;;  %v2936_v13 = vpack.i.bf16 %v1281_v46, %v3667_v55 }
 0x553   :  { %2872 = vrot.lane.b32.xlu0 %v2861_v50, %s3080_s20  ;;  %2877 = vrot.lane.b32.xlu1 %v2861_v50, %s3081_s21 }
 0x557   :  { %2882 = vrot.lane.b32.xlu0 %v2861_v50, %s3082_s22  ;;  %2887 = vrot.lane.b32.xlu1 %v2861_v50, %s3083_s23 }
 0x55b   :  { %2892 = vrot.lane.b32.xlu0 %v2861_v50, %s3084_s24  ;;  %2897 = vrot.lane.b32.xlu1 %v2896_v44, %s3078_s18 }
 0x55f   :  { %2907 = vrot.lane.b32.xlu0 %v2896_v44, %s3080_s20  ;;  %2902 = vrot.lane.b32.xlu1 %v2896_v44, %s3079_s19 }
 0x563   :  { %2917 = vrot.lane.b32.xlu0 %v2896_v44, %s3082_s22  ;;  %2912 = vrot.lane.b32.xlu1 %v2896_v44, %s3081_s21 }
 0x567   :  { %1344 = vrot.lane.b32.xlu0 %v3661_v57, %s3080_s20  ;;  %2922 = vrot.lane.b32.xlu1 %v2896_v44, %s3083_s23 }
 0x56b   :  { %1396 = vrot.lane.b32.xlu0 %v3661_v57, %s3082_s22  ;;  %1318 = vrot.lane.b32.xlu1 %v3661_v57, %s3079_s19 }
 0x56f   :  { %1370 = vrot.lane.b32.xlu1 %v3661_v57, %s3081_s21  ;;  %2927 = vrot.lane.b32.xlu0 %v2926_v59, %s3078_s18 }
 0x573   :  { %1422 = vrot.lane.b32.xlu1 %v3661_v57, %s3083_s23  ;;  %2932 = vrot.lane.b32.xlu0 %v2896_v44, %s3084_s24 }
 0x577   :  { %1468 = vrot.lane.b32.xlu1 %v1268_v4, %s3086_s25  ;;  %1448 = vrot.lane.b32.xlu0 %v3661_v57, %s3084_s24 }
 0x57b   :  { %1466 = vrot.lane.b32.xlu1 %v1280_v11, %s3086_s25  ;;  %1470 = vrot.lane.b32.xlu0 %v3639_v51, %s3086_s25 }
 0x57f   :  { %1472 = vrot.lane.b32.xlu1 %v3647_v53, %s3086_s25  ;;  %1474 = vrot.lane.b32.xlu0 %v3661_v57, %s3086_s25 }
 0x583   :  { %2937 = vrot.lane.b32.xlu1 %v2936_v13, %s3079_s19  ;;  %1296 = vrot.lane.b32.xlu0 %v1281_v46, %s3078_s18 }
 0x587   :  { %2947 = vrot.lane.b32.xlu1 %v2936_v13, %s3081_s21  ;;  %2942 = vrot.lane.b32.xlu0 %v2936_v13, %s3080_s20 }
 0x58b   :  { %2957 = vrot.lane.b32.xlu1 %v2936_v13, %s3083_s23  ;;  %2952 = vrot.lane.b32.xlu0 %v2936_v13, %s3082_s22 }
 0x58f   :  { %1476 = vrot.lane.b32.xlu1 %v3667_v55, %s3086_s25  ;;  %2962 = vrot.lane.b32.xlu0 %v2936_v13, %s3084_s24 }
 0x593   :  { %1478 = vrot.lane.b32.xlu0 %v1281_v46, %s3086_s25 }
 0x5c1   :  { %v3703_v38 = vpop.permute.xlu0 %2862  ;;  %v3705_v62 = vpop.permute.xlu1 %2867 }
 0x5c2   :  { %v2865_v47 = vunpack.i.h.bf16 %v3703_v38  ;;  %v2864_v3 = vunpack.i.l.bf16 %v3703_v38  ;;  %v2870_v33 = vunpack.i.h.bf16 %v3705_v62  ;;  %v2869_v20 = vunpack.i.l.bf16 %v3705_v62 }
 0x5c4   :  { %v1299_v58 = vsel %vm86_vm1, %v2864_v3, %v2865_v47  ;;  %v1325_v40 = vsel %vm113_vm5, %v2869_v20, %v2870_v33 }
 0x5c5   :  { %v3712_v37 = vpop.permute.xlu0 %2872  ;;  %v3714_v52 = vpop.permute.xlu1 %2877  ;;  %v2542_v5 = vpack.c.bf16 %v1299_v58, %v1268_v4 }
 0x5c6   :  { %v2875_v7 = vunpack.i.h.bf16 %v3712_v37  ;;  %v2874_v17 = vunpack.i.l.bf16 %v3712_v37  ;;  %v2880_v31 = vunpack.i.h.bf16 %v3714_v52  ;;  %v2879_v15 = vunpack.i.l.bf16 %v3714_v52 }
 0x5c7   :  { %2543 = vmatprep.subr.bf16.mxu0 %v2542_v5 }
 0x5c8   :  { %v1351_v26 = vsel %vm140_vm6, %v2874_v17, %v2875_v7  ;;  %v1377_v48 = vsel %vm167_vm7, %v2879_v15, %v2880_v31 }
 0x5c9   :  { %v3716_v9 = vpop.permute.xlu0 %2882  ;;  %v3718_v16 = vpop.permute.xlu1 %2887  ;;  %v2547_v39 = vpack.c.bf16 %v1351_v26, %v1325_v40 }
 0x5ca   :  { %v2885_v63 = vunpack.i.h.bf16 %v3716_v9  ;;  %v2884_v22 = vunpack.i.l.bf16 %v3716_v9  ;;  %v2890_v6 = vunpack.i.h.bf16 %v3718_v16  ;;  %v2889_v43 = vunpack.i.l.bf16 %v3718_v16 }
 0x5cc   :  { %v1403_v29 = vsel %vm194_vm8, %v2884_v22, %v2885_v63  ;;  %v1429_v46 = vsel %vm221_vm9, %v2889_v43, %v2890_v6 }
 0x5cd   :  { %v3724_v24 = vpop.permute.xlu0 %2892  ;;  %v2898_v28 = vpop.permute.xlu1 %2897  ;;  %v2551_v50 = vpack.c.bf16 %v1403_v29, %v1377_v48 }
 0x5ce   :  { %v2899_v61 = vunpack.i.l.bf16 %v2898_v28  ;;  %v2895_v8 = vunpack.i.h.bf16 %v3724_v24  ;;  %v2894_v60 = vunpack.i.l.bf16 %v3724_v24  ;;  %v2900_v5 = vunpack.i.h.bf16 %v2898_v28 }
 0x5d0   :  { %v1298_v30 = vsel %vm86_vm1, %v2899_v61, %v2864_v3  ;;  %v1455_v27 = vsel %vm248_vm10, %v2894_v60, %v2895_v8  ;;  %v1300_v26 = vsel %vm86_vm1, %v2865_v47, %v2900_v5 }
 0x5d1   :  { %v2544_v56 = vpack.c.bf16 %v1298_v30, %v3634_v25  ;;  %v2908_v34 = vpop.permute.xlu0 %2907  ;;  %v2903_v35 = vpop.permute.xlu1 %2902  ;;  %v2555_v13 = vpack.c.bf16 %v1455_v27, %v1429_v46 }
 0x5d2   :  { %v2909_v32 = vunpack.i.l.bf16 %v2908_v34  ;;  %v2904_v23 = vunpack.i.l.bf16 %v2903_v35  ;;  %v2905_v61 = vunpack.i.h.bf16 %v2903_v35  ;;  %v2910_v30 = vunpack.i.h.bf16 %v2908_v34 }
 0x5d3   :  { %2546 = vmatpush1.bf16.msk.msra.mxu0 %vm3237_vm4, %v2544_v56  ;;  %v2561_v35 = vpack.c.bf16 %v1300_v26, %v3639_v51 }
 0x5d4   :  { %v1350_v41 = vsel %vm140_vm6, %v2909_v32, %v2874_v17  ;;  %v1324_v42 = vsel %vm113_vm5, %v2904_v23, %v2869_v20  ;;  %2548 = vmatprep.subr.bf16.mxu0 %v2547_v39  ;;  %v1352_v34 = vsel %vm140_vm6, %v2875_v7, %v2910_v30  ;;  %v1326_v29 = vsel %vm113_vm5, %v2870_v33, %v2905_v61 }
 0x5d5   :  { %v2549_v1 = vpack.c.bf16 %v1350_v41, %v1324_v42  ;;  %v2918_v10 = vpop.permute.xlu0 %2917  ;;  %v2913_v25 = vpop.permute.xlu1 %2912  ;;  %v2565_v7 = vpack.c.bf16 %v1352_v34, %v1326_v29 }
 0x5d6   :  { %v2919_v45 = vunpack.i.l.bf16 %v2918_v10  ;;  %v2914_v4 = vunpack.i.l.bf16 %v2913_v25  ;;  %v2915_v39 = vunpack.i.h.bf16 %v2913_v25  ;;  %v2920_v41 = vunpack.i.h.bf16 %v2918_v10 }
 0x5d7   :  { %2550 = vmatpush1.bf16.msra.mxu0 %v2549_v1 }
 0x5d8   :  { %v1402_v11 = vsel %vm194_vm8, %v2919_v45, %v2884_v22  ;;  %v1376_v44 = vsel %vm167_vm7, %v2914_v4, %v2879_v15  ;;  %2552 = vmatprep.subr.bf16.mxu0 %v2551_v50  ;;  %v1378_v10 = vsel %vm167_vm7, %v2880_v31, %v2915_v39  ;;  %v3816_v31 = vld [vmem:[%s4136_s4] sm:$0xff] }
 0x5d9   :  { %v2553_v54 = vpack.c.bf16 %v1402_v11, %v1376_v44  ;;  %v3757_v49 = vpop.permute.xlu0 %1344  ;;  %v3759_v59 = vpop.permute.xlu1 %2922 }
 0x5da   :  { %v2924_v15 = vunpack.i.l.bf16 %v3759_v59  ;;  %v1353_v38 = vsel %vm140_vm6, %v2910_v30, %v3757_v49  ;;  %v2925_v45 = vunpack.i.h.bf16 %v3759_v59 }
 0x5db   :  { %2554 = vmatpush1.bf16.msra.mxu0 %v2553_v54 }
 0x5dc   :  { %2556 = vmatprep.subr.bf16.mxu0 %v2555_v13  ;;  %v1430_v59 = vsel %vm221_vm9, %v2890_v6, %v2925_v45 }
 0x5dd   :  { %v3764_v3 = vpop.permute.xlu0 %1396  ;;  %v3766_v58 = vpop.permute.xlu1 %1318 }
 0x5de   :  { %v1327_v56 = vsel %vm113_vm5, %v2905_v61, %v3766_v58  ;;  %v1405_v62 = vsel %vm194_vm8, %v2920_v41, %v3764_v3 }
 0x5df   :  { %v2563_v42 = vpack.c.bf16 %v1353_v38, %v1327_v56 }
 0x5e1   :  { %v3768_v17 = vpop.permute.xlu0 %2927  ;;  %v3770_v20 = vpop.permute.xlu1 %1370 }
 0x5e2   :  { %v2929_v22 = vunpack.i.l.bf16 %v3768_v17  ;;  %v1379_v51 = vsel %vm167_vm7, %v2915_v39, %v3770_v20  ;;  %v2930_v46 = vunpack.i.h.bf16 %v3768_v17 }
 0x5e4   :  { %v1301_v40 = vsel %vm86_vm1, %v2900_v5, %v2929_v22  ;;  %v1302_v16 = vsel %vm86_vm1, %v2929_v22, %v2930_v46 }
 0x5e5   :  { %v2933_v28 = vpop.permute.xlu0 %2932  ;;  %v3780_v32 = vpop.permute.xlu1 %1422  ;;  %v2559_v23 = vpack.c.bf16 %v1301_v40, %v3647_v53  ;;  %v1428_v53 = vsel %vm221_vm9, %v2924_v15, %v2889_v43  ;;  %v1404_v43 = vsel %vm194_vm8, %v2885_v63, %v2920_v41  ;;  %v2577_v15 = vpack.c.bf16 %v1302_v16, %v3661_v57 }
 0x5e6   :  { %v2934_v47 = vunpack.i.l.bf16 %v2933_v28  ;;  %v2935_v33 = vunpack.i.h.bf16 %v2933_v28  ;;  %v2569_v11 = vpack.c.bf16 %v1404_v43, %v1378_v10  ;;  %v1431_v9 = vsel %vm221_vm9, %v2925_v45, %v3780_v32 }
 0x5e7   :  { %2560 = vmatprep.subr.bf16.mxu1 %v2559_v23 }
 0x5e8   :  { %v1454_v1 = vsel %vm248_vm10, %v2934_v47, %v2894_v60  ;;  %2562 = vmatpush1.bf16.msra.mxu1 %v2561_v35  ;;  %v2567_v60 = vpack.c.bf16 %v1405_v62, %v1379_v51  ;;  %v1456_v44 = vsel %vm248_vm10, %v2895_v8, %v2935_v33 }
 0x5e9   :  { %v2557_v25 = vpack.c.bf16 %v1454_v1, %v1428_v53  ;;  %v3796_v48 = vpop.permute.xlu0 %1448  ;;  %v1469_v37 = vpop.permute.xlu1 %1468  ;;  %2564 = vmatprep.subr.bf16.mxu1 %v2563_v42  ;;  %v2573_v24 = vpack.c.bf16 %v1456_v44, %v1430_v59 }
 0x5ea   :  { %v1457_v4 = vsel %vm248_vm10, %v2935_v33, %v3796_v48 }
 0x5eb   :  { %2558 = vmatpush1.bf16.msra.mxu0 %v2557_v25  ;;  %v2571_v54 = vpack.c.bf16 %v1457_v4, %v1431_v9 }
 0x5ec   :  { %2566 = vmatpush1.bf16.msra.mxu1 %v2565_v7 }
 0x5ed   :  { %v1471_v50 = vpop.permute.xlu0 %1470  ;;  %v1467_v27 = vpop.permute.xlu1 %1466  ;;  %2568 = vmatprep.subr.bf16.mxu1 %v2567_v60 }
 0x5ee   :  { %v1480_v63 = vsel %vm275_vm11, %v1467_v27, %v1469_v37  ;;  %v1481_v52 = vsel %vm275_vm11, %v1469_v37, %v1471_v50 }
 0x5ef   :  { %1511 = vmatprep.subr.mxu0 %v1481_v52 }
 0x5f0   :  { %1512 = vmatpush1.msra.mxu0 %v1480_v63  ;;  %2570 = vmatpush1.bf16.msra.mxu1 %v2569_v11 }
 0x5f1   :  { %v3825_v13 = vpop.permute.xlu0 %1474  ;;  %v1473_v5 = vpop.permute.xlu1 %1472  ;;  %2433 = vmatmul.mubr.msk.f32.vlgmr.msra.gmra.mrb[10].mxu0 %vm288_vm12, %v3816_v31  ;;  %2572 = vmatprep.subr.bf16.mxu1 %v2571_v54 }
 0x5f2   :  { %1701 = vmatprep.mubr.f32.mxu0 %v3085_v21  ;;  %v1483_v8 = vsel %vm275_vm11, %v1473_v5, %v3825_v13  ;;  %v1482_v26 = vsel %vm275_vm11, %v1471_v50, %v1473_v5 }
 0x5f4   :  { %2574 = vmatpush1.bf16.msra.mxu1 %v2573_v24  ;;  %v1720_v24 = vld [vmem:[%s4137_s5] sm:$0xff] }
 0x5f5   :  { %v1297_v61 = vpop.permute.xlu0 %1296  ;;  %v2938_v6 = vpop.permute.xlu1 %2937  ;;  %1582 = vmatprep.subr.mxu1 %v1483_v8 }
 0x5f6   :  { %v1303_v17 = vsel %vm86_vm1, %v2930_v46, %v1297_v61  ;;  %v2940_v56 = vunpack.i.h.bf16 %v2938_v6  ;;  %v2939_v40 = vunpack.i.l.bf16 %v2938_v6 }
 0x5f7   :  { %v2575_v30 = vpack.c.bf16 %v1303_v17, %v3667_v55 }
 0x5f8   :  { %1583 = vmatpush1.msra.mxu1 %v1482_v26  ;;  %v1328_v55 = vsel %vm113_vm5, %v3766_v58, %v2939_v40  ;;  %v1329_v47 = vsel %vm113_vm5, %v2939_v40, %v2940_v56 }
 0x5f9   :  { %v2943_v28 = vpop.permute.xlu0 %2942  ;;  %v2948_v23 = vpop.permute.xlu1 %2947  ;;  %2434 = vmatmul.mubr.msk.f32.vlgmr.msra.gmra.mrb[8].mxu1 %vm288_vm12, %v3816_v31  ;;  %2576 = vmatprep.subr.bf16.mxu0 %v2575_v30 }
 0x5fa   :  { %v2945_v22 = vunpack.i.h.bf16 %v2943_v28  ;;  %v2944_v35 = vunpack.i.l.bf16 %v2943_v28  ;;  %2578 = vmatpush1.bf16.msra.mxu0 %v2577_v15  ;;  %1788 = vmatprep.mubr.f32.mxu1 %v3085_v21  ;;  %v2950_v39 = vunpack.i.h.bf16 %v2948_v23  ;;  %v2949_v38 = vunpack.i.l.bf16 %v2948_v23 }
 0x5fc   :  { %v1354_v57 = vsel %vm140_vm6, %v3757_v49, %v2944_v35  ;;  %v1355_v34 = vsel %vm140_vm6, %v2944_v35, %v2945_v22  ;;  %v1380_v25 = vsel %vm167_vm7, %v3770_v20, %v2949_v38  ;;  %v1381_v37 = vsel %vm167_vm7, %v2949_v38, %v2950_v39 }
 0x5fd   :  { %v2581_v29 = vpack.c.bf16 %v1354_v57, %v1328_v55  ;;  %v2953_v41 = vpop.permute.xlu0 %2952  ;;  %v2958_v42 = vpop.permute.xlu1 %2957  ;;  %v2579_v53 = vpack.c.bf16 %v1355_v34, %v1329_v47 }
 0x5fe   :  { %v2955_v51 = vunpack.i.h.bf16 %v2953_v41  ;;  %v2954_v1 = vunpack.i.l.bf16 %v2953_v41  ;;  %v2960_v49 = vunpack.i.h.bf16 %v2958_v42  ;;  %v2959_v7 = vunpack.i.l.bf16 %v2958_v42 }
 0x5ff   :  { %2580 = vmatprep.subr.bf16.mxu0 %v2579_v53 }
 0x600   :  { %v1406_v58 = vsel %vm194_vm8, %v3764_v3, %v2954_v1  ;;  %2582 = vmatpush1.bf16.msra.mxu0 %v2581_v29  ;;  %v1407_v62 = vsel %vm194_vm8, %v2954_v1, %v2955_v51  ;;  %v1432_v20 = vsel %vm221_vm9, %v3780_v32, %v2959_v7  ;;  %v1433_v3 = vsel %vm221_vm9, %v2959_v7, %v2960_v49 }
 0x601   :  { %v2585_v33 = vpack.c.bf16 %v1406_v58, %v1380_v25  ;;  %v2963_v43 = vpop.permute.xlu0 %2962  ;;  %v2583_v10 = vpack.c.bf16 %v1407_v62, %v1381_v37  ;;  %v1477_v63 = vpop.permute.xlu1 %1476 }
 0x602   :  { %v2965_v60 = vunpack.i.h.bf16 %v2963_v43  ;;  %v2964_v45 = vunpack.i.l.bf16 %v2963_v43  ;;  %v1484_v32 = vsel %vm275_vm11, %v3825_v13, %v1477_v63 }
 0x603   :  { %2584 = vmatprep.subr.bf16.mxu0 %v2583_v10 }
 0x604   :  { %v1458_v4 = vsel %vm248_vm10, %v3796_v48, %v2964_v45  ;;  %2586 = vmatpush1.bf16.msra.mxu0 %v2585_v33  ;;  %v1459_v50 = vsel %vm248_vm10, %v2964_v45, %v2965_v60 }
 0x605   :  { %v2589_v27 = vpack.c.bf16 %v1458_v4, %v1432_v20  ;;  %v1479_v11 = vpop.permute.xlu0 %1478  ;;  %v2587_v9 = vpack.c.bf16 %v1459_v50, %v1433_v3 }
 0x606   :  { %v1485_v52 = vsel %vm275_vm11, %v1477_v63, %v1479_v11 }
 0x607   :  { %2588 = vmatprep.subr.bf16.mxu0 %v2587_v9 }
 0x608   :  { %2590 = vmatpush1.bf16.msra.mxu0 %v2589_v27 }
 0x609   :  { %1653 = vmatprep.subr.mxu0 %v1485_v52 }
 0x60c   :  { %1654 = vmatpush1.msra.mxu0 %v1484_v32 }
 0x60d   :  { %2435 = vmatmul.mubr.msk.f32.vlgmr.msra.gmra.mrb[12].mxu0 %vm288_vm12, %v3816_v31 }
 0x60e   :  { %1930 = vmatprep.mubr.f32.mxu0 %v3085_v21 }
 0x6c4   :  { %v1561_v48 = vpop.f32.mrb[10].mxu0 }
 0x6c5   :  { %v1708_v44 = vmax.f32 %v1561_v48, 0.0  ;;  %v1563_v54 = vpop.f32.mrb[11].mxu0 }
 0x6c6   :  { %v1709_v59 = vmax.f32 %v1563_v54, 0.0 }
 0x6c7   :  { %v1714_v46 = vmul.f32 %v1708_v44, %v3343_v0 }
 0x6c8   :  { %v1715_v5 = vmul.f32 %v1709_v59, %v3345_v2 }
 0x6ca   :  { %1724 = vmatprep.subr.mxu1 %v1715_v5 }
 0x6cb   :  { %1725 = vmatpush1.msra.mxu1 %v1714_v46 }
 0x6cc   :  { %v1632_v13 = vpop.f32.mrb[8].mxu1  ;;  %2436 = vmatmul.mubr.msk.f32.vlgmr.msra.gmra.mrb[10].mxu1 %vm549_vm13, %v1720_v24 }
 0x6cd   :  { %v1710_v31 = vmax.f32 %v1632_v13, 0.0  ;;  %v1634_v8 = vpop.f32.mrb[9].mxu1  ;;  %1859 = vmatprep.mubr.f32.mxu1 %v3085_v21 }
 0x6ce   :  { %v1711_v16 = vmax.f32 %v1634_v8, 0.0 }
 0x6cf   :  { %v1716_v6 = vmul.f32 %v1710_v31, %v3356_v14 }
 0x6d0   :  { %v1717_v61 = vmul.f32 %v1711_v16, %v3353_v12 }
 0x6d2   :  { %1795 = vmatprep.subr.mxu1 %v1717_v61 }
 0x6d3   :  { %1796 = vmatpush1.msra.mxu1 %v1716_v6 }
 0x6d4   :  { %2437 = vmatmul.mubr.msk.f32.vlgmr.msra.gmra.mrb[12].mxu1 %vm549_vm13, %v1720_v24 }
 0x6d5   :  { %2253 = vmatprep.mubr.f32.mxu1 %v3085_v21 }
 0x6e0   :  { %v1703_v17 = vpop.f32.mrb[12].mxu0 }
 0x6e1   :  { %v1712_v26 = vmax.f32 %v1703_v17, 0.0  ;;  %v1705_v30 = vpop.f32.mrb[13].mxu0 }
 0x6e2   :  { %v1713_v15 = vmax.f32 %v1705_v30, 0.0 }
 0x6e3   :  { %v1718_v56 = vmul.f32 %v1712_v26, %v3362_v19 }
 0x6e4   :  { %v1719_v40 = vmul.f32 %v1713_v15, %v3364_v18 }
 0x6e6   :  { %1866 = vmatprep.subr.mxu0 %v1719_v40 }
 0x6e7   :  { %1867 = vmatpush1.msra.mxu0 %v1718_v56 }
 0x6e8   :  { %2438 = vmatmul.mubr.msk.f32.vlgmr.msra.gmra.mrb[14].mxu0 %vm549_vm13, %v1720_v24 }
 0x6e9   :  { %2324 = vmatprep.mubr.f32.mxu0 %v3085_v21 }
 0x79f   :  { %v1790_v28 = vpop.f32.mrb[10].mxu1 }
 0x7a0   :  { %v1937_v23 = vmax.f32 %v1790_v28, 0.0  ;;  %v1792_v22 = vpop.f32.mrb[11].mxu1 }
 0x7a1   :  { %v1938_v35 = vmax.f32 %v1792_v22, 0.0 }
 0x7a2   :  { %1950 = vrot.lane.b32.xlu1 %v1937_v23, %s3077_s9 }
 0x7a3   :  { %1952 = vrot.lane.b32.xlu0 %v1938_v35, %s3077_s9 }
 0x7a7   :  { %v1861_v39 = vpop.f32.mrb[12].mxu1 }
 0x7a8   :  { %v1939_v38 = vmax.f32 %v1861_v39, 0.0  ;;  %v1863_v55 = vpop.f32.mrb[13].mxu1 }
 0x7a9   :  { %v1940_v57 = vmax.f32 %v1863_v55, 0.0 }
 0x7aa   :  { %1954 = vrot.lane.b32.xlu1 %v1939_v38, %s3077_s9 }
 0x7ab   :  { %1956 = vrot.lane.b32.xlu0 %v1940_v57, %s3077_s9 }
 0x7bb   :  { %v1932_v47 = vpop.f32.mrb[14].mxu0 }
 0x7bc   :  { %v1941_v34 = vmax.f32 %v1932_v47, 0.0  ;;  %v1934_v29 = vpop.f32.mrb[15].mxu0 }
 0x7bd   :  { %v1942_v41 = vmax.f32 %v1934_v29, 0.0 }
 0x7be   :  { %1958 = vrot.lane.b32.xlu1 %v1941_v34, %s3077_s9 }
 0x7bf   :  { %1960 = vrot.lane.b32.xlu0 %v1942_v41, %s3077_s9 }
 0x814   :  { %v3885_v42 = vpop.permute.xlu1 %1950 }
 0x815   :  { %v1974_v53 = vsel %vm55_vm0, 0.0, %v3885_v42  ;;  %v1953_v51 = vpop.permute.xlu0 %1952 }
 0x816   :  { %2160 = vrot.lane.b32.xlu1 %v1974_v53, %s3086_s25  ;;  %2134 = vrot.lane.b32.xlu0 %v1974_v53, %s3084_s24  ;;  %v1962_v1 = vsel %vm55_vm0, %v3885_v42, %v1953_v51 }
 0x81a   :  { %2162 = vrot.lane.b32.xlu1 %v1962_v1, %s3086_s25 }
 0x81c   :  { %v1955_v25 = vpop.permute.xlu1 %1954 }
 0x81d   :  { %v3895_v37 = vsel %vm55_vm0, %v1953_v51, %v1955_v25  ;;  %v1957_v49 = vpop.permute.xlu0 %1956 }
 0x81e   :  { %v2966_v58 = vpack.i.bf16 %v3895_v37, %v1962_v1  ;;  %v3905_v7 = vsel %vm55_vm0, %v1955_v25, %v1957_v49 }
 0x81f   :  { %v3006_v62 = vpack.i.bf16 %v3905_v7, %v1974_v53 }
 0x820   :  { %2967 = vrot.lane.b32.xlu1 %v2966_v58, %s3078_s18  ;;  %2977 = vrot.lane.b32.xlu0 %v2966_v58, %s3080_s20 }
 0x824   :  { %2972 = vrot.lane.b32.xlu1 %v2966_v58, %s3079_s19  ;;  %2987 = vrot.lane.b32.xlu0 %v2966_v58, %s3082_s22 }
 0x828   :  { %2982 = vrot.lane.b32.xlu1 %v2966_v58, %s3081_s21  ;;  %2997 = vrot.lane.b32.xlu0 %v2966_v58, %s3084_s24 }
 0x82c   :  { %2992 = vrot.lane.b32.xlu1 %v2966_v58, %s3083_s23  ;;  %2164 = vrot.lane.b32.xlu0 %v3895_v37, %s3086_s25 }
 0x830   :  { %3007 = vrot.lane.b32.xlu1 %v3006_v62, %s3079_s19  ;;  %3002 = vrot.lane.b32.xlu0 %v3006_v62, %s3078_s18  ;;  %v1959_v33 = vpop.permute.xlu1 %1958 }
 0x831   :  { %v1961_v43 = vpop.permute.xlu0 %1960  ;;  %v3916_v10 = vsel %vm55_vm0, %v1957_v49, %v1959_v33 }
 0x832   :  { %v3919_v60 = vsel %vm55_vm0, %v1959_v33, %v1961_v43  ;;  %v3031_v45 = vpack.i.bf16 %v3916_v10, %v3905_v7  ;;  %v1975_v4 = vsel %vm55_vm0, %v1961_v43, 0.0 }
 0x833   :  { %v3036_v20 = vpack.i.bf16 %v3919_v60, %v3916_v10  ;;  %v3066_v3 = vpack.i.bf16 %v1975_v4, %v3919_v60 }
 0x834   :  { %3017 = vrot.lane.b32.xlu1 %v3006_v62, %s3081_s21  ;;  %3012 = vrot.lane.b32.xlu0 %v3006_v62, %s3080_s20 }
 0x838   :  { %3027 = vrot.lane.b32.xlu1 %v3006_v62, %s3083_s23  ;;  %3022 = vrot.lane.b32.xlu0 %v3006_v62, %s3082_s22 }
 0x83c   :  { %3032 = vrot.lane.b32.xlu0 %v3031_v45, %s3084_s24  ;;  %3037 = vrot.lane.b32.xlu1 %v3036_v20, %s3078_s18 }
 0x840   :  { %1990 = vrot.lane.b32.xlu0 %v1975_v4, %s3078_s18  ;;  %2016 = vrot.lane.b32.xlu1 %v1975_v4, %s3079_s19 }
 0x844   :  { %3042 = vrot.lane.b32.xlu0 %v3036_v20, %s3079_s19  ;;  %2042 = vrot.lane.b32.xlu1 %v1975_v4, %s3080_s20 }
 0x848   :  { %3047 = vrot.lane.b32.xlu0 %v3036_v20, %s3080_s20  ;;  %2068 = vrot.lane.b32.xlu1 %v1975_v4, %s3081_s21 }
 0x84c   :  { %3052 = vrot.lane.b32.xlu0 %v3036_v20, %s3081_s21  ;;  %2094 = vrot.lane.b32.xlu1 %v1975_v4, %s3082_s22 }
 0x850   :  { %3057 = vrot.lane.b32.xlu0 %v3036_v20, %s3082_s22  ;;  %2120 = vrot.lane.b32.xlu1 %v1975_v4, %s3083_s23 }
 0x854   :  { %3062 = vrot.lane.b32.xlu0 %v3036_v20, %s3083_s23  ;;  %3067 = vrot.lane.b32.xlu1 %v3066_v3, %s3084_s24 }
 0x858   :  { %2166 = vrot.lane.b32.xlu0 %v3905_v7, %s3086_s25  ;;  %2168 = vrot.lane.b32.xlu1 %v3916_v10, %s3086_s25 }
 0x85c   :  { %2170 = vrot.lane.b32.xlu0 %v3919_v60, %s3086_s25  ;;  %2172 = vrot.lane.b32.xlu1 %v1975_v4, %s3086_s25 }
 0x888   :  { %v3950_v50 = vpop.permute.xlu1 %2160  ;;  %v3954_v11 = vpop.permute.xlu0 %2134 }
 0x88c   :  { %v3952_v27 = vpop.permute.xlu1 %2162 }
 0x892   :  { %v3956_v9 = vpop.permute.xlu1 %2967  ;;  %v3958_v63 = vpop.permute.xlu0 %2977 }
 0x893   :  { %v2970_v52 = vunpack.i.h.bf16 %v3956_v9  ;;  %v2969_v32 = vunpack.i.l.bf16 %v3956_v9  ;;  %v2980_v16 = vunpack.i.h.bf16 %v3958_v63  ;;  %v2979_v61 = vunpack.i.l.bf16 %v3958_v63 }
 0x895   :  { %v1993_v48 = vsel %vm86_vm1, %v2969_v32, %v2970_v52  ;;  %v2045_v55 = vsel %vm140_vm6, %v2979_v61, %v2980_v16 }
 0x896   :  { %v3963_v44 = vpop.permute.xlu1 %2972  ;;  %v3965_v54 = vpop.permute.xlu0 %2987  ;;  %v2591_v59 = vpack.c.bf16 %v1993_v48, %v1962_v1 }
 0x897   :  { %v2975_v31 = vunpack.i.h.bf16 %v3963_v44  ;;  %v2974_v8 = vunpack.i.l.bf16 %v3963_v44  ;;  %v2990_v23 = vunpack.i.h.bf16 %v3965_v54  ;;  %v2989_v22 = vunpack.i.l.bf16 %v3965_v54 }
 0x898   :  { %2592 = vmatprep.subr.bf16.mxu1 %v2591_v59 }
 0x899   :  { %v2019_v56 = vsel %vm113_vm5, %v2974_v8, %v2975_v31  ;;  %v2097_v62 = vsel %vm194_vm8, %v2989_v22, %v2990_v23 }
 0x89a   :  { %v3967_v46 = vpop.permute.xlu1 %2982  ;;  %v3969_v5 = vpop.permute.xlu0 %2997  ;;  %v2596_v47 = vpack.c.bf16 %v2045_v55, %v2019_v56 }
 0x89b   :  { %v2985_v30 = vunpack.i.h.bf16 %v3967_v46  ;;  %v2984_v15 = vunpack.i.l.bf16 %v3967_v46  ;;  %v3000_v1 = vunpack.i.h.bf16 %v3969_v5  ;;  %v2999_v25 = vunpack.i.l.bf16 %v3969_v5 }
 0x89d   :  { %v2071_v41 = vsel %vm167_vm7, %v2984_v15, %v2985_v30 }
 0x89e   :  { %v3971_v24 = vpop.permute.xlu1 %2992  ;;  %v3973_v13 = vpop.permute.xlu0 %2164  ;;  %v2600_v45 = vpack.c.bf16 %v2097_v62, %v2071_v41 }
 0x89f   :  { %v2995_v34 = vunpack.i.h.bf16 %v3971_v24  ;;  %v2994_v29 = vunpack.i.l.bf16 %v3971_v24 }
 0x8a1   :  { %v2123_v4 = vsel %vm221_vm9, %v2994_v29, %v2995_v34 }
 0x8a2   :  { %v3979_v6 = vpop.permute.xlu1 %3007  ;;  %v3003_v17 = vpop.permute.xlu0 %3002 }
 0x8a3   :  { %v3004_v26 = vunpack.i.l.bf16 %v3003_v17  ;;  %v3009_v40 = vunpack.i.l.bf16 %v3979_v6  ;;  %v3005_v20 = vunpack.i.h.bf16 %v3003_v17 }
 0x8a5   :  { %v1992_v28 = vsel %vm86_vm1, %v3004_v26, %v2969_v32  ;;  %v1994_v56 = vsel %vm86_vm1, %v2970_v52, %v3005_v20  ;;  %v2175_v52 = vsel %vm275_vm11, %v3952_v27, %v3973_v13 }
 0x8a6   :  { %v2593_v35 = vpack.c.bf16 %v1992_v28, %v3885_v42  ;;  %v3991_v39 = vpop.permute.xlu1 %3017  ;;  %v3993_v38 = vpop.permute.xlu0 %3012  ;;  %v2018_v42 = vsel %vm113_vm5, %v3009_v40, %v2974_v8  ;;  %v2149_v8 = vsel %vm248_vm10, %v2999_v25, %v3000_v1 }
 0x8a7   :  { %v3014_v57 = vunpack.i.l.bf16 %v3993_v38  ;;  %v3019_v53 = vunpack.i.l.bf16 %v3991_v39  ;;  %v2604_v26 = vpack.c.bf16 %v2149_v8, %v2123_v4  ;;  %v3020_v44 = vunpack.i.h.bf16 %v3991_v39 }
 0x8a8   :  { %2595 = vmatpush1.bf16.msk.msra.mxu1 %vm3237_vm4, %v2593_v35 }
 0x8a9   :  { %v2044_v51 = vsel %vm140_vm6, %v3014_v57, %v2979_v61  ;;  %2597 = vmatprep.subr.bf16.mxu1 %v2596_v47  ;;  %v2070_v3 = vsel %vm167_vm7, %v3019_v53, %v2984_v15  ;;  %v2148_v15 = vsel %vm248_vm10, %v3954_v11, %v2999_v25  ;;  %v2610_v47 = vpack.c.bf16 %v1994_v56, %v3895_v37 }
 0x8aa   :  { %v2598_v58 = vpack.c.bf16 %v2044_v51, %v2018_v42  ;;  %v4011_v49 = vpop.permute.xlu1 %3027  ;;  %v4013_v36 = vpop.permute.xlu0 %3022  ;;  %v2174_v37 = vsel %vm275_vm11, %v3950_v50, %v3952_v27  ;;  %v3010_v53 = vunpack.i.h.bf16 %v3979_v6  ;;  %v3015_v25 = vunpack.i.h.bf16 %v3993_v38 }
 0x8ab   :  { %v3029_v33 = vunpack.i.l.bf16 %v4011_v49  ;;  %v3024_v43 = vunpack.i.l.bf16 %v4013_v36  ;;  %v3025_v8 = vunpack.i.h.bf16 %v4013_v36 }
 0x8ac   :  { %2599 = vmatpush1.bf16.msra.mxu1 %v2598_v58 }
 0x8ad   :  { %v2096_v9 = vsel %vm194_vm8, %v3024_v43, %v2989_v22  ;;  %2601 = vmatprep.subr.bf16.mxu1 %v2600_v45  ;;  %v2122_v61 = vsel %vm221_vm9, %v3029_v33, %v2994_v29 }
 0x8ae   :  { %v2602_v32 = vpack.c.bf16 %v2096_v9, %v2070_v3  ;;  %v3038_v48 = vpop.permute.xlu1 %3037  ;;  %v4025_v59 = vpop.permute.xlu0 %3032  ;;  %v2606_v22 = vpack.c.bf16 %v2148_v15, %v2122_v61  ;;  %v3030_v15 = vunpack.i.h.bf16 %v4011_v49 }
 0x8af   :  { %v3039_v17 = vunpack.i.l.bf16 %v3038_v48  ;;  %v3040_v40 = vunpack.i.h.bf16 %v3038_v48 }
 0x8b0   :  { %2603 = vmatpush1.bf16.msra.mxu1 %v2602_v32 }
 0x8b1   :  { %2605 = vmatprep.subr.bf16.mxu1 %v2604_v26  ;;  %v1995_v28 = vsel %vm86_vm1, %v3005_v20, %v3039_v17  ;;  %v1996_v11 = vsel %vm86_vm1, %v3039_v17, %v3040_v40  ;;  %v2072_v26 = vsel %vm167_vm7, %v2985_v30, %v3020_v44 }
 0x8b2   :  { %v2017_v35 = vpop.permute.xlu1 %2016  ;;  %v1991_v55 = vpop.permute.xlu0 %1990  ;;  %v2608_v57 = vpack.c.bf16 %v1995_v28, %v3905_v7  ;;  %v4045_v7 = vld [vmem:[%s4138_s6] sm:$0xff]  ;;  %v2626_v58 = vpack.c.bf16 %v1996_v11, %v3916_v10  ;;  %v2046_v10 = vsel %vm140_vm6, %v2980_v16, %v3015_v25 }
 0x8b3   :  { %v1997_v29 = vsel %vm86_vm1, %v3040_v40, %v1991_v55  ;;  %v2098_v40 = vsel %vm194_vm8, %v2990_v23, %v3025_v8 }
 0x8b4   :  { %2607 = vmatpush1.bf16.msra.mxu1 %v2606_v22  ;;  %2609 = vmatprep.subr.bf16.mxu0 %v2608_v57  ;;  %v2624_v51 = vpack.c.bf16 %v1997_v29, %v3919_v60  ;;  %v2020_v60 = vsel %vm113_vm5, %v2975_v31, %v3010_v53  ;;  %v3035_v22 = vunpack.i.h.bf16 %v4025_v59 }
 0x8b5   :  { %2205 = vmatprep.subr.mxu1 %v2175_v52  ;;  %2611 = vmatpush1.bf16.msra.mxu0 %v2610_v47  ;;  %v2614_v16 = vpack.c.bf16 %v2046_v10, %v2020_v60  ;;  %v2618_v47 = vpack.c.bf16 %v2098_v40, %v2072_v26 }
 0x8b6   :  { %v2043_v41 = vpop.permute.xlu1 %2042  ;;  %v3043_v42 = vpop.permute.xlu0 %3042 }
 0x8b7   :  { %v3045_v62 = vunpack.i.h.bf16 %v3043_v42  ;;  %v3044_v33 = vunpack.i.l.bf16 %v3043_v42 }
 0x8b8   :  { %2206 = vmatpush1.msra.mxu1 %v2174_v37 }
 0x8b9   :  { %2625 = vmatprep.subr.bf16.mxu1 %v2624_v51  ;;  %2441 = vmatmul.mubr.msk.f32.vlgmr.msra.gmra.mrb[14].mxu1 %vm288_vm12, %v4045_v7  ;;  %v2022_v6 = vsel %vm113_vm5, %v3044_v33, %v3045_v62  ;;  %v2021_v38 = vsel %vm113_vm5, %v3010_v53, %v3044_v33  ;;  %v2124_v51 = vsel %vm221_vm9, %v2995_v34, %v3030_v15 }
 0x8ba   :  { %v2069_v43 = vpop.permute.xlu1 %2068  ;;  %v3048_v45 = vpop.permute.xlu0 %3047  ;;  %2627 = vmatpush1.bf16.msra.mxu1 %v2626_v58  ;;  %2395 = vmatprep.mubr.f32.mxu1 %v3085_v21  ;;  %v2023_v21 = vsel %vm113_vm5, %v3045_v62, %v2017_v35  ;;  %v3034_v35 = vunpack.i.l.bf16 %v4025_v59 }
 0x8bb   :  { %v3050_v50 = vunpack.i.h.bf16 %v3048_v45  ;;  %v3049_v27 = vunpack.i.l.bf16 %v3048_v45 }
 0x8bc   :  { %v2151_v58 = vsel %vm248_vm10, %v3034_v35, %v3035_v22 }
 0x8bd   :  { %v2048_v20 = vsel %vm140_vm6, %v3049_v27, %v3050_v50  ;;  %v2047_v4 = vsel %vm140_vm6, %v3015_v25, %v3049_v27  ;;  %v2049_v3 = vsel %vm140_vm6, %v3050_v50, %v2043_v41  ;;  %v2150_v25 = vsel %vm248_vm10, %v3000_v1, %v3034_v35 }
 0x8be   :  { %v2630_v9 = vpack.c.bf16 %v2048_v20, %v2022_v6  ;;  %v2095_v31 = vpop.permute.xlu1 %2094  ;;  %v3053_v32 = vpop.permute.xlu0 %3052  ;;  %v2612_v63 = vpack.c.bf16 %v2047_v4, %v2021_v38  ;;  %v2628_v48 = vpack.c.bf16 %v2049_v3, %v2023_v21  ;;  %v2622_v27 = vpack.c.bf16 %v2150_v25, %v2124_v51 }
 0x8bf   :  { %v3055_v61 = vunpack.i.h.bf16 %v3053_v32  ;;  %v3054_v17 = vunpack.i.l.bf16 %v3053_v32 }
 0x8c0   :  { %2613 = vmatprep.subr.bf16.mxu0 %v2612_v63  ;;  %2629 = vmatprep.subr.bf16.mxu1 %v2628_v48 }
 0x8c1   :  { %2615 = vmatpush1.bf16.msra.mxu0 %v2614_v16  ;;  %2631 = vmatpush1.bf16.msra.mxu1 %v2630_v9  ;;  %v2074_v55 = vsel %vm167_vm7, %v3054_v17, %v3055_v61  ;;  %v2073_v46 = vsel %vm167_vm7, %v3020_v44, %v3054_v17  ;;  %v2075_v49 = vsel %vm167_vm7, %v3055_v61, %v2069_v43 }
 0x8c2   :  { %v2121_v56 = vpop.permute.xlu1 %2120  ;;  %v3058_v39 = vpop.permute.xlu0 %3057 }
 0x8c3   :  { %v3060_v28 = vunpack.i.h.bf16 %v3058_v39  ;;  %v3059_v36 = vunpack.i.l.bf16 %v3058_v39 }
 0x8c5   :  { %v2100_v30 = vsel %vm194_vm8, %v3059_v36, %v3060_v28  ;;  %v2099_v57 = vsel %vm194_vm8, %v3025_v8, %v3059_v36  ;;  %v2101_v54 = vsel %vm194_vm8, %v3060_v28, %v2095_v31 }
 0x8c6   :  { %v2634_v23 = vpack.c.bf16 %v2100_v30, %v2074_v55  ;;  %v3068_v29 = vpop.permute.xlu1 %3067  ;;  %v3063_v52 = vpop.permute.xlu0 %3062  ;;  %v2616_v11 = vpack.c.bf16 %v2099_v57, %v2073_v46  ;;  %v2632_v41 = vpack.c.bf16 %v2101_v54, %v2075_v49 }
 0x8c7   :  { %v3070_v42 = vunpack.i.h.bf16 %v3068_v29  ;;  %v3069_v59 = vunpack.i.l.bf16 %v3068_v29  ;;  %v3065_v37 = vunpack.i.h.bf16 %v3063_v52  ;;  %v3064_v53 = vunpack.i.l.bf16 %v3063_v52 }
 0x8c8   :  { %2617 = vmatprep.subr.bf16.mxu0 %v2616_v11  ;;  %2633 = vmatprep.subr.bf16.mxu1 %v2632_v41 }
 0x8c9   :  { %v2152_v62 = vsel %vm248_vm10, %v3035_v22, %v3069_v59  ;;  %v2126_v33 = vsel %vm221_vm9, %v3064_v53, %v3065_v37  ;;  %2619 = vmatpush1.bf16.msra.mxu0 %v2618_v47  ;;  %2635 = vmatpush1.bf16.msra.mxu1 %v2634_v23  ;;  %v2125_v43 = vsel %vm221_vm9, %v3030_v15, %v3064_v53 }
 0x8ca   :  { %v2638_v45 = vpack.c.bf16 %v2152_v62, %v2126_v33  ;;  %v2169_v24 = vpop.permute.xlu1 %2168  ;;  %v2167_v50 = vpop.permute.xlu0 %2166  ;;  %v2620_v34 = vpack.c.bf16 %v2151_v58, %v2125_v43  ;;  %v2127_v5 = vsel %vm221_vm9, %v3065_v37, %v2121_v56  ;;  %v2153_v1 = vsel %vm248_vm10, %v3069_v59, %v3070_v42 }
 0x8cb   :  { %v2636_v60 = vpack.c.bf16 %v2153_v1, %v2127_v5  ;;  %v2177_v10 = vsel %vm275_vm11, %v2167_v50, %v2169_v24  ;;  %v2176_v21 = vsel %vm275_vm11, %v3973_v13, %v2167_v50 }
 0x8cc   :  { %2621 = vmatprep.subr.bf16.mxu0 %v2620_v34 }
 0x8cd   :  { %2637 = vmatprep.subr.bf16.mxu1 %v2636_v60  ;;  %2623 = vmatpush1.bf16.msra.mxu0 %v2622_v27 }
 0x8ce   :  { %2639 = vmatpush1.bf16.msra.mxu1 %v2638_v45  ;;  %v2173_v6 = vpop.permute.xlu1 %2172  ;;  %v2171_v38 = vpop.permute.xlu0 %2170  ;;  %2276 = vmatprep.subr.mxu0 %v2177_v10 }
 0x8cf   :  { %v2178_v20 = vsel %vm275_vm11, %v2169_v24, %v2171_v38  ;;  %v2179_v4 = vsel %vm275_vm11, %v2171_v38, %v2173_v6 }
 0x8d0   :  { %2347 = vmatprep.subr.mxu1 %v2179_v4 }
 0x8d1   :  { %2277 = vmatpush1.msra.mxu0 %v2176_v21 }
 0x8d2   :  { %2348 = vmatpush1.msra.mxu1 %v2178_v20  ;;  %2442 = vmatmul.mubr.msk.f32.vlgmr.msra.gmra.mrb[16].mxu0 %vm288_vm12, %v4045_v7 }
 0x8d3   :  { %2443 = vmatmul.mubr.msk.f32.vlgmr.msra.gmra.mrb[16].mxu1 %vm288_vm12, %v4045_v7 }
 0x98c   :  { %v2255_v3 = vpop.f32.mrb[14].mxu1 }
 0x98d   :  { %v2402_v44 = vmul.f32 %v2255_v3, %v3343_v0  ;;  %v2257_v9 = vpop.f32.mrb[15].mxu1 }
 0x98e   :  { %v2403_v31 = vmul.f32 %v2257_v9, %v3345_v2 }
 0x98f   :  { %2408 = vst [vmem:[%s4139_s8] sm:$0xff] %v2402_v44 }
 0x990   :  { %2409 = vst [vmem:[%s4139_s8 + $0x8] sm:$0xff] %v2403_v31 }
 0x9a5   :  { %v2326_v13 = vpop.f32.mrb[16].mxu0 }
 0x9a6   :  { %v2404_v32 = vmul.f32 %v2326_v13, %v3356_v14  ;;  %v2397_v63 = vpop.f32.mrb[16].mxu1  ;;  %v2328_v48 = vpop.f32.mrb[17].mxu0 }
 0x9a7   :  { %v2406_v7 = vmul.f32 %v2397_v63, %v3362_v19  ;;  %v2405_v0 = vmul.f32 %v2328_v48, %v3353_v12  ;;  %v2399_v16 = vpop.f32.mrb[17].mxu1 }
 0x9a8   :  { %2410 = vst [vmem:[%s4139_s8 + $0x10] sm:$0xff] %v2404_v32  ;;  %v2407_v2 = vmul.f32 %v2399_v16, %v3364_v18 }
 0x9a9   :  { %2412 = vst [vmem:[%s4139_s8 + $0x20] sm:$0xff] %v2406_v7  ;;  %2411 = vst [vmem:[%s4139_s8 + $0x18] sm:$0xff] %v2405_v0 }
 0x9aa   :  { %2413 = vst [vmem:[%s4139_s8 + $0x28] sm:$0xff] %v2407_v2 }

</bundles_post_ra>
